<compile_context>
chip_gen: v7x
topology: tpu7x:2x2x1
jax: 0.10.0
libtpu: 0.0.40
codegen_flags: <defaults>
</compile_context>

<pallas_src>
import functools

import jax
import jax.numpy as jnp
from jax.experimental import pallas as pl
from jax.experimental.pallas import tpu as pltpu


# -----------------------------------------------------------------------------
# Fused Pallas kernel: LayerNorm -> ReLU -> ReplicationPad(1) -> Conv3x3 + bias
# One grid step == one batch sample (NHWC).
# -----------------------------------------------------------------------------
def basic_block_kernel(x_ref, gamma_ref, beta_ref, w_ref, b_ref, o_ref, *, eps):
    _, H, W, C = x_ref.shape
    Cout = o_ref.shape[3]
    n_elem = H * W * C

    x = x_ref[0].reshape(H * W, C)                       # (HW, C) f32, lane = C

    # ---- per-sample LayerNorm: mean / unbiased std over all C*H*W elements ----
    row_sum = jnp.sum(x, axis=1, keepdims=True)          # (HW, 1)
    mean = jnp.sum(row_sum, axis=0, keepdims=True) / n_elem        # (1, 1)
    d = x - mean
    row_sq = jnp.sum(d * d, axis=1, keepdims=True)       # (HW, 1)
    var = jnp.sum(row_sq, axis=0, keepdims=True) / (n_elem - 1)    # (1, 1)
    y = d / (jnp.sqrt(var) + eps)
    y = y * gamma_ref[...] + beta_ref[...]               # per-channel affine, (1, C)

    # ---- ReLU ----
    y = jnp.maximum(y, 0.0)

    # ---- ReplicationPad2d(1), entirely in VMEM ----
    y = y.reshape(H, W, C)
    y = jnp.concatenate([y[:1], y, y[H - 1:]], axis=0)             # (H+2, W,   C)
    y = jnp.concatenate([y[:, :1], y, y[:, W - 1:]], axis=1)       # (H+2, W+2, C)

    # ---- 3x3 conv: 9 per-tap GEMMs on the MXU, bf16 operands, f32 accumulation ----
    acc = jnp.zeros((H * W, Cout), jnp.float32)
    for di in range(3):
        for dj in range(3):
            a = y[di:di + H, dj:dj + W, :].reshape(H * W, C).astype(jnp.bfloat16)
            wt = w_ref[di * 3 + dj]                                # (C, Cout) bf16
            acc = acc + jnp.dot(a, wt, preferred_element_type=jnp.float32)

    acc = acc + b_ref[...]                                         # bias (1, Cout), f32
    o_ref[0] = acc.reshape(H, W, Cout).astype(o_ref.dtype)


# -----------------------------------------------------------------------------
# Parameters (deterministic). Kernel-friendly weight layout built ONCE here.
# -----------------------------------------------------------------------------
def init_params(key, inplanes, outplanes):
    k_w, k_b, k_g = jax.random.split(key, 3)
    fan_in = inplanes * 3 * 3
    w_oihw = jax.random.normal(k_w, (outplanes, inplanes, 3, 3), jnp.float32) * (2.0 / fan_in) ** 0.5
    b = jax.random.normal(k_b, (outplanes,), jnp.float32) * 0.01
    gamma = jax.random.uniform(k_g, (inplanes,), jnp.float32)      # MUNIT LayerNorm init
    beta = jnp.zeros((inplanes,), jnp.float32)
    # Per-tap layout (kh*kw, Cin, Cout), pre-cast to bf16 for the MXU (done once, not per call).
    w_taps = jnp.transpose(w_oihw, (2, 3, 1, 0)).reshape(9, inplanes, outplanes).astype(jnp.bfloat16)
    return {"w_oihw": w_oihw, "w_taps": w_taps, "b": b, "gamma": gamma, "beta": beta}


# -----------------------------------------------------------------------------
# Wrapper: NCHW in / NCHW out (PyTorch interface); NHWC + fused kernel inside.
# -----------------------------------------------------------------------------
def basic_block_forward(x_nchw, params, eps=1e-5):
    N, C, H, W = x_nchw.shape
    Cout = params["b"].shape[0]

    x_nhwc = jnp.transpose(x_nchw, (0, 2, 3, 1))          # single relayout each way
    gamma2 = params["gamma"].reshape(1, C)
    beta2 = params["beta"].reshape(1, C)
    bias2 = params["b"].reshape(1, Cout)

    out_nhwc = pl.pallas_call(
        functools.partial(basic_block_kernel, eps=eps),
        out_shape=jax.ShapeDtypeStruct((N, H, W, Cout), jnp.float32),
        grid=(N,),
        in_specs=[
            pl.BlockSpec((1, H, W, C), lambda n: (n, 0, 0, 0)),
            pl.BlockSpec((1, C), lambda n: (0, 0)),
            pl.BlockSpec((1, C), lambda n: (0, 0)),
            pl.BlockSpec((9, C, Cout), lambda n: (0, 0, 0)),
            pl.BlockSpec((1, Cout), lambda n: (0, 0)),
        ],
        out_specs=pl.BlockSpec((1, H, W, Cout), lambda n: (n, 0, 0, 0)),
        compiler_params=pltpu.CompilerParams(dimension_semantics=("parallel",)),
    )(x_nhwc, gamma2, beta2, params["w_taps"], bias2)

    return jnp.transpose(out_nhwc, (0, 3, 1, 2))


# -----------------------------------------------------------------------------
# Pure-JAX reference (f32 everywhere) for correctness checking.
# -----------------------------------------------------------------------------
def basic_block_reference(x_nchw, params, eps=1e-5):
    gamma, beta = params["gamma"], params["beta"]
    w, b = params["w_oihw"], params["b"]
    N = x_nchw.shape[0]
    flat = x_nchw.reshape(N, -1)
    mean = flat.mean(axis=1).reshape(N, 1, 1, 1)
    std = jnp.sqrt(flat.var(axis=1, ddof=1)).reshape(N, 1, 1, 1)
    y = (x_nchw - mean) / (std + eps)
    y = y * gamma.reshape(1, -1, 1, 1) + beta.reshape(1, -1, 1, 1)
    y = jnp.maximum(y, 0.0)
    y = jnp.pad(y, ((0, 0), (0, 0), (1, 1), (1, 1)), mode="edge")
    out = jax.lax.conv_general_dilated(
        y, w, window_strides=(1, 1), padding="VALID",
        dimension_numbers=("NCHW", "OIHW", "NCHW"))
    return out + b.reshape(1, -1, 1, 1)


if __name__ == "__main__":
    inplanes, outplanes = 4, 8
    N, H, W = 2, 16, 16

    key = jax.random.PRNGKey(0)
    kx, kp = jax.random.split(key)
    x = jax.random.normal(kx, (N, inplanes, H, W), jnp.float32)    # NCHW like PyTorch
    params = init_params(kp, inplanes, outplanes)

    fwd = jax.jit(basic_block_forward)
    out = fwd(x, params)
    jax.block_until_ready(out)

    assert out.shape == (N, outplanes, H, W), out.shape
    assert out.dtype == jnp.float32
    assert bool(jnp.all(jnp.isfinite(out)))

    # Correctness vs f32 reference (kernel uses bf16 MXU operands -> loose tolerance).
    ref = basic_block_reference(x, params)
    max_err = float(jnp.max(jnp.abs(out - ref)))
    assert max_err < 1e-1, f"max abs err {max_err}"

    print("KERNEL_OK")
</pallas_src>

<mosaic_0001>
module attributes {stable_mosaic.version = 11 : i64} {
  func.func @basic_block_kernel(%arg0: i32, %arg1: memref<1x16x16x4xf32, #tpu.memory_space<vmem>>, %arg2: memref<1x4xf32, #tpu.memory_space<vmem>>, %arg3: memref<1x4xf32, #tpu.memory_space<vmem>>, %arg4: memref<9x4x8xbf16, #tpu.memory_space<vmem>>, %arg5: memref<1x8xf32, #tpu.memory_space<vmem>>, %arg6: memref<1x16x16x8xf32, #tpu.memory_space<vmem>>) attributes {dimension_semantics = [#tpu.dimension_semantics<parallel>], iteration_bounds = array<i64: 2>, scalar_prefetch = 0 : i64, scratch_operands = 0 : i64, tpu.core_type = #tpu.core_type<tc>, window_params = [{transform_indices = @transform_0, window_bounds = array<i64: 1, 16, 16, 4>}, {pipeline_mode = #tpu.pipeline_mode<synchronous>, transform_indices = @transform_1, window_bounds = array<i64: 1, 4>}, {pipeline_mode = #tpu.pipeline_mode<synchronous>, transform_indices = @transform_2, window_bounds = array<i64: 1, 4>}, {pipeline_mode = #tpu.pipeline_mode<synchronous>, transform_indices = @transform_3, window_bounds = array<i64: 9, 4, 8>}, {pipeline_mode = #tpu.pipeline_mode<synchronous>, transform_indices = @transform_4, window_bounds = array<i64: 1, 8>}, {transform_indices = @transform_5, window_bounds = array<i64: 1, 16, 16, 8>}]} {
    %c0 = arith.constant 0 : index
    %c0_0 = arith.constant 0 : index
    %c0_1 = arith.constant 0 : index
    %c0_2 = arith.constant 0 : index
    %0 = vector.load %arg1[%c0, %c0_0, %c0_1, %c0_2] : memref<1x16x16x4xf32, #tpu.memory_space<vmem>>, vector<1x16x16x4xf32>
    %1 = vector.shape_cast %0 : vector<1x16x16x4xf32> to vector<16x16x4xf32>
    %2 = vector.shape_cast %1 : vector<16x16x4xf32> to vector<256x4xf32>
    %cst = arith.constant dense<0.000000e+00> : vector<256xf32>
    %3 = vector.multi_reduction <add>, %2, %cst [1] : vector<256x4xf32> to vector<256xf32>
    %4 = vector.shape_cast %3 : vector<256xf32> to vector<256x1xf32>
    %cst_3 = arith.constant dense<0.000000e+00> : vector<1xf32>
    %5 = vector.multi_reduction <add>, %4, %cst_3 [0] : vector<256x1xf32> to vector<1xf32>
    %6 = vector.shape_cast %5 : vector<1xf32> to vector<1x1xf32>
    %cst_4 = arith.constant 1.024000e+03 : f32
    %7 = vector.broadcast %cst_4 : f32 to vector<1x1xf32>
    %8 = arith.divf %6, %7 : vector<1x1xf32>
    %9 = vector.broadcast %8 : vector<1x1xf32> to vector<256x4xf32>
    %10 = arith.subf %2, %9 : vector<256x4xf32>
    %11 = arith.mulf %10, %10 : vector<256x4xf32>
    %cst_5 = arith.constant dense<0.000000e+00> : vector<256xf32>
    %12 = vector.multi_reduction <add>, %11, %cst_5 [1] : vector<256x4xf32> to vector<256xf32>
    %13 = vector.shape_cast %12 : vector<256xf32> to vector<256x1xf32>
    %cst_6 = arith.constant dense<0.000000e+00> : vector<1xf32>
    %14 = vector.multi_reduction <add>, %13, %cst_6 [0] : vector<256x1xf32> to vector<1xf32>
    %15 = vector.shape_cast %14 : vector<1xf32> to vector<1x1xf32>
    %cst_7 = arith.constant 1.023000e+03 : f32
    %16 = vector.broadcast %cst_7 : f32 to vector<1x1xf32>
    %17 = arith.divf %15, %16 : vector<1x1xf32>
    %18 = math.sqrt %17 : vector<1x1xf32>
    %cst_8 = arith.constant 9.99999974E-6 : f32
    %19 = vector.broadcast %cst_8 : f32 to vector<1x1xf32>
    %20 = arith.addf %18, %19 : vector<1x1xf32>
    %21 = vector.broadcast %20 : vector<1x1xf32> to vector<256x4xf32>
    %22 = arith.divf %10, %21 : vector<256x4xf32>
    %c0_9 = arith.constant 0 : index
    %c0_10 = arith.constant 0 : index
    %23 = vector.load %arg2[%c0_9, %c0_10] : memref<1x4xf32, #tpu.memory_space<vmem>>, vector<1x4xf32>
    %24 = vector.broadcast %23 : vector<1x4xf32> to vector<256x4xf32>
    %25 = arith.mulf %22, %24 : vector<256x4xf32>
    %c0_11 = arith.constant 0 : index
    %c0_12 = arith.constant 0 : index
    %26 = vector.load %arg3[%c0_11, %c0_12] : memref<1x4xf32, #tpu.memory_space<vmem>>, vector<1x4xf32>
    %27 = vector.broadcast %26 : vector<1x4xf32> to vector<256x4xf32>
    %28 = arith.addf %25, %27 : vector<256x4xf32>
    %cst_13 = arith.constant 0.000000e+00 : f32
    %29 = vector.broadcast %cst_13 : f32 to vector<256x4xf32>
    %30 = arith.maximumf %28, %29 : vector<256x4xf32>
    %31 = vector.shape_cast %30 : vector<256x4xf32> to vector<16x16x4xf32>
    %32 = vector.extract_strided_slice %31 {offsets = [0, 0, 0], sizes = [1, 16, 4], strides = [1, 1, 1]} : vector<16x16x4xf32> to vector<1x16x4xf32>
    %33 = vector.extract_strided_slice %31 {offsets = [15, 0, 0], sizes = [1, 16, 4], strides = [1, 1, 1]} : vector<16x16x4xf32> to vector<1x16x4xf32>
    %34 = tpu.concatenate %32, %31, %33 in 0 : vector<1x16x4xf32>, vector<16x16x4xf32>, vector<1x16x4xf32> -> vector<18x16x4xf32>
    %35 = vector.extract_strided_slice %34 {offsets = [0, 0, 0], sizes = [18, 1, 4], strides = [1, 1, 1]} : vector<18x16x4xf32> to vector<18x1x4xf32>
    %36 = vector.extract_strided_slice %34 {offsets = [0, 15, 0], sizes = [18, 1, 4], strides = [1, 1, 1]} : vector<18x16x4xf32> to vector<18x1x4xf32>
    %37 = tpu.concatenate %35, %34, %36 in 1 : vector<18x1x4xf32>, vector<18x16x4xf32>, vector<18x1x4xf32> -> vector<18x18x4xf32>
    %cst_14 = arith.constant 0.000000e+00 : f32
    %38 = vector.broadcast %cst_14 : f32 to vector<256x8xf32>
    %39 = vector.extract_strided_slice %37 {offsets = [0, 0, 0], sizes = [16, 16, 4], strides = [1, 1, 1]} : vector<18x18x4xf32> to vector<16x16x4xf32>
    %40 = vector.shape_cast %39 : vector<16x16x4xf32> to vector<256x4xf32>
    %41 = arith.truncf %40 : vector<256x4xf32> to vector<256x4xbf16>
    %c0_15 = arith.constant 0 : index
    %c0_16 = arith.constant 0 : index
    %c0_17 = arith.constant 0 : index
    %42 = vector.load %arg4[%c0_15, %c0_16, %c0_17] : memref<9x4x8xbf16, #tpu.memory_space<vmem>>, vector<1x4x8xbf16>
    %43 = vector.shape_cast %42 : vector<1x4x8xbf16> to vector<4x8xbf16>
    %cst_18 = arith.constant dense<0.000000e+00> : vector<256x8xf32>
    %44 = tpu.matmul %41, %43, %cst_18 {dimension_numbers = #tpu.dot_dimension_numbers<[1], [0], [0], [1], [0, 0, 1, 1], [], []>} : vector<256x4xbf16>, vector<4x8xbf16>, vector<256x8xf32> -> vector<256x8xf32>
    %45 = arith.addf %38, %44 : vector<256x8xf32>
    %46 = vector.extract_strided_slice %37 {offsets = [0, 1, 0], sizes = [16, 16, 4], strides = [1, 1, 1]} : vector<18x18x4xf32> to vector<16x16x4xf32>
    %47 = vector.shape_cast %46 : vector<16x16x4xf32> to vector<256x4xf32>
    %48 = arith.truncf %47 : vector<256x4xf32> to vector<256x4xbf16>
    %c1 = arith.constant 1 : index
    %c0_19 = arith.constant 0 : index
    %c0_20 = arith.constant 0 : index
    %49 = vector.load %arg4[%c1, %c0_19, %c0_20] : memref<9x4x8xbf16, #tpu.memory_space<vmem>>, vector<1x4x8xbf16>
    %50 = vector.shape_cast %49 : vector<1x4x8xbf16> to vector<4x8xbf16>
    %cst_21 = arith.constant dense<0.000000e+00> : vector<256x8xf32>
    %51 = tpu.matmul %48, %50, %cst_21 {dimension_numbers = #tpu.dot_dimension_numbers<[1], [0], [0], [1], [0, 0, 1, 1], [], []>} : vector<256x4xbf16>, vector<4x8xbf16>, vector<256x8xf32> -> vector<256x8xf32>
    %52 = arith.addf %45, %51 : vector<256x8xf32>
    %53 = vector.extract_strided_slice %37 {offsets = [0, 2, 0], sizes = [16, 16, 4], strides = [1, 1, 1]} : vector<18x18x4xf32> to vector<16x16x4xf32>
    %54 = vector.shape_cast %53 : vector<16x16x4xf32> to vector<256x4xf32>
    %55 = arith.truncf %54 : vector<256x4xf32> to vector<256x4xbf16>
    %c2 = arith.constant 2 : index
    %c0_22 = arith.constant 0 : index
    %c0_23 = arith.constant 0 : index
    %56 = vector.load %arg4[%c2, %c0_22, %c0_23] : memref<9x4x8xbf16, #tpu.memory_space<vmem>>, vector<1x4x8xbf16>
    %57 = vector.shape_cast %56 : vector<1x4x8xbf16> to vector<4x8xbf16>
    %cst_24 = arith.constant dense<0.000000e+00> : vector<256x8xf32>
    %58 = tpu.matmul %55, %57, %cst_24 {dimension_numbers = #tpu.dot_dimension_numbers<[1], [0], [0], [1], [0, 0, 1, 1], [], []>} : vector<256x4xbf16>, vector<4x8xbf16>, vector<256x8xf32> -> vector<256x8xf32>
    %59 = arith.addf %52, %58 : vector<256x8xf32>
    %60 = vector.extract_strided_slice %37 {offsets = [1, 0, 0], sizes = [16, 16, 4], strides = [1, 1, 1]} : vector<18x18x4xf32> to vector<16x16x4xf32>
    %61 = vector.shape_cast %60 : vector<16x16x4xf32> to vector<256x4xf32>
    %62 = arith.truncf %61 : vector<256x4xf32> to vector<256x4xbf16>
    %c3 = arith.constant 3 : index
    %c0_25 = arith.constant 0 : index
    %c0_26 = arith.constant 0 : index
    %63 = vector.load %arg4[%c3, %c0_25, %c0_26] : memref<9x4x8xbf16, #tpu.memory_space<vmem>>, vector<1x4x8xbf16>
    %64 = vector.shape_cast %63 : vector<1x4x8xbf16> to vector<4x8xbf16>
    %cst_27 = arith.constant dense<0.000000e+00> : vector<256x8xf32>
    %65 = tpu.matmul %62, %64, %cst_27 {dimension_numbers = #tpu.dot_dimension_numbers<[1], [0], [0], [1], [0, 0, 1, 1], [], []>} : vector<256x4xbf16>, vector<4x8xbf16>, vector<256x8xf32> -> vector<256x8xf32>
    %66 = arith.addf %59, %65 : vector<256x8xf32>
    %67 = vector.extract_strided_slice %37 {offsets = [1, 1, 0], sizes = [16, 16, 4], strides = [1, 1, 1]} : vector<18x18x4xf32> to vector<16x16x4xf32>
    %68 = vector.shape_cast %67 : vector<16x16x4xf32> to vector<256x4xf32>
    %69 = arith.truncf %68 : vector<256x4xf32> to vector<256x4xbf16>
    %c4 = arith.constant 4 : index
    %c0_28 = arith.constant 0 : index
    %c0_29 = arith.constant 0 : index
    %70 = vector.load %arg4[%c4, %c0_28, %c0_29] : memref<9x4x8xbf16, #tpu.memory_space<vmem>>, vector<1x4x8xbf16>
    %71 = vector.shape_cast %70 : vector<1x4x8xbf16> to vector<4x8xbf16>
    %cst_30 = arith.constant dense<0.000000e+00> : vector<256x8xf32>
    %72 = tpu.matmul %69, %71, %cst_30 {dimension_numbers = #tpu.dot_dimension_numbers<[1], [0], [0], [1], [0, 0, 1, 1], [], []>} : vector<256x4xbf16>, vector<4x8xbf16>, vector<256x8xf32> -> vector<256x8xf32>
    %73 = arith.addf %66, %72 : vector<256x8xf32>
    %74 = vector.extract_strided_slice %37 {offsets = [1, 2, 0], sizes = [16, 16, 4], strides = [1, 1, 1]} : vector<18x18x4xf32> to vector<16x16x4xf32>
    %75 = vector.shape_cast %74 : vector<16x16x4xf32> to vector<256x4xf32>
    %76 = arith.truncf %75 : vector<256x4xf32> to vector<256x4xbf16>
    %c5 = arith.constant 5 : index
    %c0_31 = arith.constant 0 : index
    %c0_32 = arith.constant 0 : index
    %77 = vector.load %arg4[%c5, %c0_31, %c0_32] : memref<9x4x8xbf16, #tpu.memory_space<vmem>>, vector<1x4x8xbf16>
    %78 = vector.shape_cast %77 : vector<1x4x8xbf16> to vector<4x8xbf16>
    %cst_33 = arith.constant dense<0.000000e+00> : vector<256x8xf32>
    %79 = tpu.matmul %76, %78, %cst_33 {dimension_numbers = #tpu.dot_dimension_numbers<[1], [0], [0], [1], [0, 0, 1, 1], [], []>} : vector<256x4xbf16>, vector<4x8xbf16>, vector<256x8xf32> -> vector<256x8xf32>
    %80 = arith.addf %73, %79 : vector<256x8xf32>
    %81 = vector.extract_strided_slice %37 {offsets = [2, 0, 0], sizes = [16, 16, 4], strides = [1, 1, 1]} : vector<18x18x4xf32> to vector<16x16x4xf32>
    %82 = vector.shape_cast %81 : vector<16x16x4xf32> to vector<256x4xf32>
    %83 = arith.truncf %82 : vector<256x4xf32> to vector<256x4xbf16>
    %c6 = arith.constant 6 : index
    %c0_34 = arith.constant 0 : index
    %c0_35 = arith.constant 0 : index
    %84 = vector.load %arg4[%c6, %c0_34, %c0_35] : memref<9x4x8xbf16, #tpu.memory_space<vmem>>, vector<1x4x8xbf16>
    %85 = vector.shape_cast %84 : vector<1x4x8xbf16> to vector<4x8xbf16>
    %cst_36 = arith.constant dense<0.000000e+00> : vector<256x8xf32>
    %86 = tpu.matmul %83, %85, %cst_36 {dimension_numbers = #tpu.dot_dimension_numbers<[1], [0], [0], [1], [0, 0, 1, 1], [], []>} : vector<256x4xbf16>, vector<4x8xbf16>, vector<256x8xf32> -> vector<256x8xf32>
    %87 = arith.addf %80, %86 : vector<256x8xf32>
    %88 = vector.extract_strided_slice %37 {offsets = [2, 1, 0], sizes = [16, 16, 4], strides = [1, 1, 1]} : vector<18x18x4xf32> to vector<16x16x4xf32>
    %89 = vector.shape_cast %88 : vector<16x16x4xf32> to vector<256x4xf32>
    %90 = arith.truncf %89 : vector<256x4xf32> to vector<256x4xbf16>
    %c7 = arith.constant 7 : index
    %c0_37 = arith.constant 0 : index
    %c0_38 = arith.constant 0 : index
    %91 = vector.load %arg4[%c7, %c0_37, %c0_38] : memref<9x4x8xbf16, #tpu.memory_space<vmem>>, vector<1x4x8xbf16>
    %92 = vector.shape_cast %91 : vector<1x4x8xbf16> to vector<4x8xbf16>
    %cst_39 = arith.constant dense<0.000000e+00> : vector<256x8xf32>
    %93 = tpu.matmul %90, %92, %cst_39 {dimension_numbers = #tpu.dot_dimension_numbers<[1], [0], [0], [1], [0, 0, 1, 1], [], []>} : vector<256x4xbf16>, vector<4x8xbf16>, vector<256x8xf32> -> vector<256x8xf32>
    %94 = arith.addf %87, %93 : vector<256x8xf32>
    %95 = vector.extract_strided_slice %37 {offsets = [2, 2, 0], sizes = [16, 16, 4], strides = [1, 1, 1]} : vector<18x18x4xf32> to vector<16x16x4xf32>
    %96 = vector.shape_cast %95 : vector<16x16x4xf32> to vector<256x4xf32>
    %97 = arith.truncf %96 : vector<256x4xf32> to vector<256x4xbf16>
    %c8 = arith.constant 8 : index
    %c0_40 = arith.constant 0 : index
    %c0_41 = arith.constant 0 : index
    %98 = vector.load %arg4[%c8, %c0_40, %c0_41] : memref<9x4x8xbf16, #tpu.memory_space<vmem>>, vector<1x4x8xbf16>
    %99 = vector.shape_cast %98 : vector<1x4x8xbf16> to vector<4x8xbf16>
    %cst_42 = arith.constant dense<0.000000e+00> : vector<256x8xf32>
    %100 = tpu.matmul %97, %99, %cst_42 {dimension_numbers = #tpu.dot_dimension_numbers<[1], [0], [0], [1], [0, 0, 1, 1], [], []>} : vector<256x4xbf16>, vector<4x8xbf16>, vector<256x8xf32> -> vector<256x8xf32>
    %101 = arith.addf %94, %100 : vector<256x8xf32>
    %c0_43 = arith.constant 0 : index
    %c0_44 = arith.constant 0 : index
    %102 = vector.load %arg5[%c0_43, %c0_44] : memref<1x8xf32, #tpu.memory_space<vmem>>, vector<1x8xf32>
    %103 = vector.broadcast %102 : vector<1x8xf32> to vector<256x8xf32>
    %104 = arith.addf %101, %103 : vector<256x8xf32>
    %105 = vector.shape_cast %104 : vector<256x8xf32> to vector<16x16x8xf32>
    %c0_45 = arith.constant 0 : index
    %c0_46 = arith.constant 0 : index
    %c0_47 = arith.constant 0 : index
    %c0_48 = arith.constant 0 : index
    %106 = vector.load %arg6[%c0_45, %c0_46, %c0_47, %c0_48] : memref<1x16x16x8xf32, #tpu.memory_space<vmem>>, vector<1x16x16x8xf32>
    %107 = vector.shape_cast %106 : vector<1x16x16x8xf32> to vector<16x16x8xf32>
    %108 = vector.shape_cast %105 : vector<16x16x8xf32> to vector<1x16x16x8xf32>
    tpu.vector_store %arg6[%c0_45, %c0_46, %c0_47, %c0_48], %108 {strides = array<i32>} : memref<1x16x16x8xf32, #tpu.memory_space<vmem>>, vector<1x16x16x8xf32>,
    return
  }
  func.func @transform_0(%arg0: i32) -> (i32, i32, i32, i32) {
    %c0_i32 = arith.constant 0 : i32
    %c0_i32_0 = arith.constant 0 : i32
    %c0_i32_1 = arith.constant 0 : i32
    %c0_i32_2 = arith.constant 0 : i32
    return %arg0, %c0_i32, %c0_i32_0, %c0_i32_1 : i32, i32, i32, i32
  }
  func.func @transform_1(%arg0: i32) -> (i32, i32) {
    %c0_i32 = arith.constant 0 : i32
    %c0_i32_0 = arith.constant 0 : i32
    %c0_i32_1 = arith.constant 0 : i32
    return %c0_i32, %c0_i32_0 : i32, i32
  }
  func.func @transform_2(%arg0: i32) -> (i32, i32) {
    %c0_i32 = arith.constant 0 : i32
    %c0_i32_0 = arith.constant 0 : i32
    %c0_i32_1 = arith.constant 0 : i32
    return %c0_i32, %c0_i32_0 : i32, i32
  }
  func.func @transform_3(%arg0: i32) -> (i32, i32, i32) {
    %c0_i32 = arith.constant 0 : i32
    %c0_i32_0 = arith.constant 0 : i32
    %c0_i32_1 = arith.constant 0 : i32
    %c0_i32_2 = arith.constant 0 : i32
    return %c0_i32, %c0_i32_0, %c0_i32_1 : i32, i32, i32
  }
  func.func @transform_4(%arg0: i32) -> (i32, i32) {
    %c0_i32 = arith.constant 0 : i32
    %c0_i32_0 = arith.constant 0 : i32
    %c0_i32_1 = arith.constant 0 : i32
    return %c0_i32, %c0_i32_0 : i32, i32
  }
  func.func @transform_5(%arg0: i32) -> (i32, i32, i32, i32) {
    %c0_i32 = arith.constant 0 : i32
    %c0_i32_0 = arith.constant 0 : i32
    %c0_i32_1 = arith.constant 0 : i32
    %c0_i32_2 = arith.constant 0 : i32
    return %arg0, %c0_i32, %c0_i32_0, %c0_i32_1 : i32, i32, i32, i32
  }
}

</mosaic_0001>

<bundles_post_ra>
// kernel: basic_block_forward.1
= control target key start
LH: loop header
LB: loop body
LE: loop exit
PB: predicated region body
PF: predicated region fallthrough
CT: control target
= control target key end

     0   :  { %s4178_s18 = smov 0   ;;  %s5768_s0 = inlined_call_operand.vmem [shape: f32[2,16,16,4], index: 0, kind: input, shape index: {}]   ;;  %s5769_s1 = inlined_call_operand.vmem [shape: f32[1,4], index: 1, kind: input, shape index: {}]   ;;  %s5770_s2 = inlined_call_operand.vmem [shape: f32[1,4], index: 2, kind: input, shape index: {}]   ;;  %s5771_s3 = inlined_call_operand.vmem [shape: bf16[9,4,8], index: 3, kind: input, shape index: {}]   ;;  %s5772_s4 = inlined_call_operand.vmem [shape: f32[1,8], index: 4, kind: input, shape index: {}]   ;;  %s5773_s5 = inlined_call_operand.vmem [shape: f32[2,16,16,8], index: 5, kind: output, shape index: {}]  }
   0x1 LB: > { %s3232_s19 = sadd.s32 4294967295, %s4146_s18   ;;  %p3236_p0 = scmp.ge.s32.totalorder %s4146_s18, 1  ;;  %s4146_s18 = sphi %s4178_s18, %s15_s18  }
   0x2   : > { %p187_p1 = scmp.lt.s32.totalorder %s4146_s18, 3 }
   0x4   : > { %p188_p2 = pnand %p3236_p0, %p187_p1 }
   0x6   : > { %191 = sbr.rel (%p188_p2) target bundleno = 1045 (0x415), region = 40 }
   0xd   : > { %p215_p3 = scmp.lt.s32.totalorder %s3232_s19, 1  ;;  %vm258_vm0 = vcmask 31744   ;;  %vm1151_vm1 = vcmask 1041408   ;;  %vm776_vm4 = vcmask 1040384   ;;  %vm983_vm5 = vcmask 1046528  }
   0xe   : > { %vm1525_vm6 = vcmask 1045504   ;;  %vm3144_vm7 = vcmask 64512  }
   0xf   : > { %s5910_s19 = smov (!%p215_p3, %s3232_s19), 1 }
  0x10   : > { %s3398_s20 = sshll.u32 %s5910_s19, 8 }
  0x11   : > { %s4194_s23 = scalar_lea.vmem %s5768_s0, %s3398_s20  ;;  %s5667_s30 = scalar_lea.vmem %s5773_s5, %s3398_s20 }
  0x12   : > { %v4197_v0 = vld [vmem:[%s4194_s23] sm:$0xff]  ;;  %v4200_v1 = vld [vmem:[%s4194_s23 + $0x10] sm:$0xff]  ;;  %v4203_v2 = vld [vmem:[%s4194_s23 + $0x8] sm:$0xff] }
  0x13   : > { %v259_v3 = vsel %vm258_vm0, %v4197_v0, 0.0  ;;  %v265_v4 = vsel %vm258_vm0, %v4200_v1, 0.0  ;;  %v4210_v5 = vld [vmem:[%s4194_s23 + $0x18] sm:$0xff]  ;;  %v262_v6 = vsel %vm258_vm0, %v4203_v2, 0.0  ;;  %v4217_v8 = vld [vmem:[%s4194_s23 + $0x20] sm:$0xff]  ;;  %v4220_v9 = vld [vmem:[%s4194_s23 + $0x28] sm:$0xff] }
  0x14   : > { %260 = vadd.xlane.f32.xlu0 %v259_v3  ;;  %266 = vadd.xlane.f32.xlu1 %v265_v4  ;;  %v268_v7 = vsel %vm258_vm0, %v4210_v5, 0.0  ;;  %v271_v10 = vsel %vm258_vm0, %v4217_v8, 0.0  ;;  %v274_v11 = vsel %vm258_vm0, %v4220_v9, 0.0  ;;  %v4227_v12 = vld [vmem:[%s4194_s23 + $0x30] sm:$0xff]  ;;  %v4230_v13 = vld [vmem:[%s4194_s23 + $0x38] sm:$0xff]  ;;  %v4237_v16 = vld [vmem:[%s4194_s23 + $0x40] sm:$0xff] }
  0x15   : > { %v277_v14 = vsel %vm258_vm0, %v4227_v12, 0.0  ;;  %v280_v15 = vsel %vm258_vm0, %v4230_v13, 0.0  ;;  %v4240_v17 = vld [vmem:[%s4194_s23 + $0x48] sm:$0xff]  ;;  %v283_v18 = vsel %vm258_vm0, %v4237_v16, 0.0  ;;  %v4247_v20 = vld [vmem:[%s4194_s23 + $0x50] sm:$0xff]  ;;  %v4250_v21 = vld [vmem:[%s4194_s23 + $0x58] sm:$0xff] }
  0x16   : > { %v286_v19 = vsel %vm258_vm0, %v4240_v17, 0.0  ;;  %v289_v22 = vsel %vm258_vm0, %v4247_v20, 0.0  ;;  %v292_v23 = vsel %vm258_vm0, %v4250_v21, 0.0  ;;  %v4257_v24 = vld [vmem:[%s4194_s23 + $0x60] sm:$0xff]  ;;  %v4260_v25 = vld [vmem:[%s4194_s23 + $0x68] sm:$0xff]  ;;  %v4267_v28 = vld [vmem:[%s4194_s23 + $0x70] sm:$0xff] }
  0x17   : > { %v295_v26 = vsel %vm258_vm0, %v4257_v24, 0.0  ;;  %v298_v27 = vsel %vm258_vm0, %v4260_v25, 0.0  ;;  %v4270_v29 = vld [vmem:[%s4194_s23 + $0x78] sm:$0xff]  ;;  %v301_v30 = vsel %vm258_vm0, %v4267_v28, 0.0  ;;  %v4277_v32 = vld [vmem:[%s4194_s23 + $0x80] sm:$0xff]  ;;  %v4280_v33 = vld [vmem:[%s4194_s23 + $0x88] sm:$0xff] }
  0x18   : > { %263 = vadd.xlane.f32.xlu0 %v262_v6  ;;  %269 = vadd.xlane.f32.xlu1 %v268_v7  ;;  %v304_v31 = vsel %vm258_vm0, %v4270_v29, 0.0  ;;  %v307_v34 = vsel %vm258_vm0, %v4277_v32, 0.0  ;;  %v310_v35 = vsel %vm258_vm0, %v4280_v33, 0.0  ;;  %v4287_v36 = vld [vmem:[%s4194_s23 + $0x90] sm:$0xff]  ;;  %v4290_v37 = vld [vmem:[%s4194_s23 + $0x98] sm:$0xff]  ;;  %v4297_v40 = vld [vmem:[%s4194_s23 + $0xa0] sm:$0xff] }
  0x19   : > { %v313_v38 = vsel %vm258_vm0, %v4287_v36, 0.0  ;;  %v316_v39 = vsel %vm258_vm0, %v4290_v37, 0.0  ;;  %v4300_v41 = vld [vmem:[%s4194_s23 + $0xa8] sm:$0xff]  ;;  %v319_v42 = vsel %vm258_vm0, %v4297_v40, 0.0  ;;  %v4307_v44 = vld [vmem:[%s4194_s23 + $0xb0] sm:$0xff]  ;;  %v4310_v45 = vld [vmem:[%s4194_s23 + $0xb8] sm:$0xff] }
  0x1a   : > { %v322_v43 = vsel %vm258_vm0, %v4300_v41, 0.0  ;;  %v325_v46 = vsel %vm258_vm0, %v4307_v44, 0.0  ;;  %v328_v47 = vsel %vm258_vm0, %v4310_v45, 0.0  ;;  %v4317_v48 = vld [vmem:[%s4194_s23 + $0xc0] sm:$0xff]  ;;  %v4320_v49 = vld [vmem:[%s4194_s23 + $0xc8] sm:$0xff]  ;;  %v4327_v52 = vld [vmem:[%s4194_s23 + $0xd0] sm:$0xff] }
  0x1b   : > { %v331_v50 = vsel %vm258_vm0, %v4317_v48, 0.0  ;;  %v334_v51 = vsel %vm258_vm0, %v4320_v49, 0.0  ;;  %v4330_v53 = vld [vmem:[%s4194_s23 + $0xd8] sm:$0xff]  ;;  %v337_v54 = vsel %vm258_vm0, %v4327_v52, 0.0  ;;  %v4337_v56 = vld [vmem:[%s4194_s23 + $0xe0] sm:$0xff]  ;;  %v4340_v57 = vld [vmem:[%s4194_s23 + $0xe8] sm:$0xff] }
  0x1c   : > { %272 = vadd.xlane.f32.xlu0 %v271_v10  ;;  %275 = vadd.xlane.f32.xlu1 %v274_v11  ;;  %v340_v55 = vsel %vm258_vm0, %v4330_v53, 0.0  ;;  %v343_v58 = vsel %vm258_vm0, %v4337_v56, 0.0  ;;  %v346_v59 = vsel %vm258_vm0, %v4340_v57, 0.0  ;;  %v4347_v60 = vld [vmem:[%s4194_s23 + $0xf0] sm:$0xff]  ;;  %v4350_v61 = vld [vmem:[%s4194_s23 + $0xf8] sm:$0xff] }
  0x1d   : > { %v349_v62 = vsel %vm258_vm0, %v4347_v60, 0.0  ;;  %v352_v63 = vsel %vm258_vm0, %v4350_v61, 0.0 }
  0x20   : > { %278 = vadd.xlane.f32.xlu0 %v277_v14  ;;  %281 = vadd.xlane.f32.xlu1 %v280_v15 }
  0x24   : > { %284 = vadd.xlane.f32.xlu0 %v283_v18  ;;  %287 = vadd.xlane.f32.xlu1 %v286_v19 }
  0x28   : > { %290 = vadd.xlane.f32.xlu0 %v289_v22  ;;  %293 = vadd.xlane.f32.xlu1 %v292_v23 }
  0x2c   : > { %296 = vadd.xlane.f32.xlu0 %v295_v26  ;;  %299 = vadd.xlane.f32.xlu1 %v298_v27 }
  0x30   : > { %302 = vadd.xlane.f32.xlu0 %v301_v30  ;;  %305 = vadd.xlane.f32.xlu1 %v304_v31 }
  0x34   : > { %308 = vadd.xlane.f32.xlu0 %v307_v34  ;;  %311 = vadd.xlane.f32.xlu1 %v310_v35 }
  0x38   : > { %314 = vadd.xlane.f32.xlu0 %v313_v38  ;;  %317 = vadd.xlane.f32.xlu1 %v316_v39 }
  0x3c   : > { %320 = vadd.xlane.f32.xlu0 %v319_v42  ;;  %323 = vadd.xlane.f32.xlu1 %v322_v43 }
  0x40   : > { %326 = vadd.xlane.f32.xlu0 %v325_v46  ;;  %329 = vadd.xlane.f32.xlu1 %v328_v47 }
  0x44   : > { %332 = vadd.xlane.f32.xlu0 %v331_v50  ;;  %335 = vadd.xlane.f32.xlu1 %v334_v51 }
  0x48   : > { %338 = vadd.xlane.f32.xlu0 %v337_v54  ;;  %341 = vadd.xlane.f32.xlu1 %v340_v55 }
  0x4c   : > { %344 = vadd.xlane.f32.xlu0 %v343_v58  ;;  %347 = vadd.xlane.f32.xlu1 %v346_v59 }
  0x50   : > { %350 = vadd.xlane.f32.xlu0 %v349_v62  ;;  %353 = vadd.xlane.f32.xlu1 %v352_v63 }
  0xa1   : > { %v261_v3 = vpop.xlane.xlu0 %260  ;;  %v267_v4 = vpop.xlane.xlu1 %266 }
  0xa5   : > { %v264_v6 = vpop.xlane.xlu0 %263  ;;  %v270_v7 = vpop.xlane.xlu1 %269 }
  0xa6   : > { %v355_v10 = vadd.f32 %v264_v6, %v261_v3 }
  0xa8   : > { %v356_v11 = vadd.f32 %v355_v10, %v267_v4 }
  0xa9   : > { %v273_v14 = vpop.xlane.xlu0 %272  ;;  %v276_v15 = vpop.xlane.xlu1 %275 }
  0xaa   : > { %v357_v18 = vadd.f32 %v356_v11, %v270_v7 }
  0xac   : > { %v358_v19 = vadd.f32 %v357_v18, %v273_v14 }
  0xad   : > { %v279_v22 = vpop.xlane.xlu0 %278  ;;  %v282_v23 = vpop.xlane.xlu1 %281 }
  0xae   : > { %v359_v26 = vadd.f32 %v358_v19, %v276_v15 }
  0xb0   : > { %v360_v27 = vadd.f32 %v359_v26, %v279_v22 }
  0xb1   : > { %v285_v30 = vpop.xlane.xlu0 %284  ;;  %v288_v31 = vpop.xlane.xlu1 %287 }
  0xb2   : > { %v361_v34 = vadd.f32 %v360_v27, %v282_v23 }
  0xb4   : > { %v362_v35 = vadd.f32 %v361_v34, %v285_v30 }
  0xb5   : > { %v291_v38 = vpop.xlane.xlu0 %290  ;;  %v294_v39 = vpop.xlane.xlu1 %293 }
  0xb6   : > { %v363_v42 = vadd.f32 %v362_v35, %v288_v31 }
  0xb8   : > { %v364_v43 = vadd.f32 %v363_v42, %v291_v38 }
  0xb9   : > { %v297_v46 = vpop.xlane.xlu0 %296  ;;  %v300_v47 = vpop.xlane.xlu1 %299 }
  0xba   : > { %v365_v50 = vadd.f32 %v364_v43, %v294_v39 }
  0xbc   : > { %v366_v51 = vadd.f32 %v365_v50, %v297_v46 }
  0xbd   : > { %v303_v54 = vpop.xlane.xlu0 %302  ;;  %v306_v55 = vpop.xlane.xlu1 %305 }
  0xbe   : > { %v367_v58 = vadd.f32 %v366_v51, %v300_v47 }
  0xc0   : > { %v368_v59 = vadd.f32 %v367_v58, %v303_v54 }
  0xc1   : > { %v309_v62 = vpop.xlane.xlu0 %308  ;;  %v312_v63 = vpop.xlane.xlu1 %311 }
  0xc2   : > { %v369_v3 = vadd.f32 %v368_v59, %v306_v55 }
  0xc4   : > { %v370_v4 = vadd.f32 %v369_v3, %v309_v62 }
  0xc5   : > { %v315_v6 = vpop.xlane.xlu0 %314  ;;  %v318_v7 = vpop.xlane.xlu1 %317 }
  0xc6   : > { %v371_v10 = vadd.f32 %v370_v4, %v312_v63 }
  0xc8   : > { %v372_v11 = vadd.f32 %v371_v10, %v315_v6 }
  0xc9   : > { %v321_v14 = vpop.xlane.xlu0 %320  ;;  %v324_v15 = vpop.xlane.xlu1 %323 }
  0xca   : > { %v373_v18 = vadd.f32 %v372_v11, %v318_v7 }
  0xcc   : > { %v374_v19 = vadd.f32 %v373_v18, %v321_v14 }
  0xcd   : > { %v327_v22 = vpop.xlane.xlu0 %326  ;;  %v330_v23 = vpop.xlane.xlu1 %329 }
  0xce   : > { %v375_v26 = vadd.f32 %v374_v19, %v324_v15 }
  0xd0   : > { %v376_v27 = vadd.f32 %v375_v26, %v327_v22 }
  0xd1   : > { %v333_v30 = vpop.xlane.xlu0 %332  ;;  %v336_v31 = vpop.xlane.xlu1 %335 }
  0xd2   : > { %v377_v34 = vadd.f32 %v376_v27, %v330_v23 }
  0xd4   : > { %v378_v35 = vadd.f32 %v377_v34, %v333_v30 }
  0xd5   : > { %v339_v38 = vpop.xlane.xlu0 %338  ;;  %v342_v39 = vpop.xlane.xlu1 %341 }
  0xd6   : > { %v379_v42 = vadd.f32 %v378_v35, %v336_v31 }
  0xd8   : > { %v380_v43 = vadd.f32 %v379_v42, %v339_v38 }
  0xd9   : > { %v345_v46 = vpop.xlane.xlu0 %344  ;;  %v348_v47 = vpop.xlane.xlu1 %347 }
  0xda   : > { %v381_v50 = vadd.f32 %v380_v43, %v342_v39 }
  0xdc   : > { %v382_v51 = vadd.f32 %v381_v50, %v345_v46 }
  0xdd   : > { %v351_v54 = vpop.xlane.xlu0 %350  ;;  %v354_v58 = vpop.xlane.xlu1 %353 }
  0xde   : > { %v383_v55 = vadd.f32 %v382_v51, %v348_v47 }
  0xe0   : > { %v384_v59 = vadd.f32 %v383_v55, %v351_v54 }
  0xe2   : > { %v385_v62 = vadd.f32 %v384_v59, %v354_v58 }
  0xe4   : > { %v386_v63 = vrot.slane %v385_v62, 4 }
  0xe6   : > { %v387_v3 = vadd.f32 %v386_v63, %v385_v62 }
  0xe8   : > { %v388_v4 = vrot.slane %v387_v3, 2 }
  0xea   : > { %v389_v6 = vadd.f32 %v388_v4, %v387_v3 }
  0xec   : > { %v390_v7 = vrot.slane %v389_v6, 1 }
  0xee   : > { %v391_v10 = vadd.f32 %v390_v7, %v389_v6 }
  0xf0   : > { %v4356_v11 = vmul.f32 0.0009765625, %v391_v10 }
  0xf2   : > { %v4360_v14 = vsub.f32 %v4197_v0, %v4356_v11  ;;  %v4364_v15 = vsub.f32 %v4203_v2, %v4356_v11  ;;  %v4368_v18 = vsub.f32 %v4200_v1, %v4356_v11  ;;  %v4372_v19 = vsub.f32 %v4210_v5, %v4356_v11 }
  0xf3   : > { %v4380_v0 = vsub.f32 %v4217_v8, %v4356_v11  ;;  %v4384_v2 = vsub.f32 %v4220_v9, %v4356_v11  ;;  %v4394_v8 = vsub.f32 %v4227_v12, %v4356_v11  ;;  %v4398_v9 = vsub.f32 %v4230_v13, %v4356_v11 }
  0xf4   : > { %v427_v22 = vmul.f32 %v4364_v15, %v4364_v15  ;;  %v426_v23 = vmul.f32 %v4360_v14, %v4360_v14  ;;  %v429_v5 = vmul.f32 %v4372_v19, %v4372_v19  ;;  %v428_v27 = vmul.f32 %v4368_v18, %v4368_v18 }
  0xf5   : > { %v431_v34 = vmul.f32 %v4384_v2, %v4384_v2  ;;  %v430_v35 = vmul.f32 %v4380_v0, %v4380_v0  ;;  %v4408_v12 = vsub.f32 %v4237_v16, %v4356_v11  ;;  %v4412_v13 = vsub.f32 %v4240_v17, %v4356_v11 }
  0xf6   : > { %v461_v1 = vsel %vm258_vm0, %v427_v22, 0.0  ;;  %v458_v26 = vsel %vm258_vm0, %v426_v23, 0.0  ;;  %v467_v30 = vsel %vm258_vm0, %v429_v5, 0.0  ;;  %v464_v31 = vsel %vm258_vm0, %v428_v27, 0.0 }
  0xf7   : > { %462 = vadd.xlane.f32.xlu1 %v461_v1  ;;  %459 = vadd.xlane.f32.xlu0 %v458_v26  ;;  %v473_v38 = vsel %vm258_vm0, %v431_v34, 0.0  ;;  %v470_v39 = vsel %vm258_vm0, %v430_v35, 0.0  ;;  %v433_v42 = vmul.f32 %v4398_v9, %v4398_v9  ;;  %v432_v43 = vmul.f32 %v4394_v8, %v4394_v8 }
  0xf8   : > { %v4422_v16 = vsub.f32 %v4247_v20, %v4356_v11  ;;  %v4426_v17 = vsub.f32 %v4250_v21, %v4356_v11  ;;  %v435_v50 = vmul.f32 %v4412_v13, %v4412_v13  ;;  %v434_v51 = vmul.f32 %v4408_v12, %v4408_v12 }
  0xf9   : > { %v479_v46 = vsel %vm258_vm0, %v433_v42, 0.0  ;;  %v476_v47 = vsel %vm258_vm0, %v432_v43, 0.0  ;;  %v4436_v20 = vsub.f32 %v4257_v24, %v4356_v11  ;;  %v4440_v21 = vsub.f32 %v4260_v25, %v4356_v11 }
  0xfa   : > { %v485_v54 = vsel %vm258_vm0, %v435_v50, 0.0  ;;  %v482_v55 = vsel %vm258_vm0, %v434_v51, 0.0  ;;  %v437_v58 = vmul.f32 %v4426_v17, %v4426_v17  ;;  %v436_v59 = vmul.f32 %v4422_v16, %v4422_v16 }
  0xfb   : > { %468 = vadd.xlane.f32.xlu1 %v467_v30  ;;  %465 = vadd.xlane.f32.xlu0 %v464_v31  ;;  %v4450_v24 = vsub.f32 %v4267_v28, %v4356_v11  ;;  %v4454_v25 = vsub.f32 %v4270_v29, %v4356_v11  ;;  %v439_v3 = vmul.f32 %v4440_v21, %v4440_v21 }
  0xfc   : > { %v491_v62 = vsel %vm258_vm0, %v437_v58, 0.0  ;;  %v488_v63 = vsel %vm258_vm0, %v436_v59, 0.0  ;;  %v438_v4 = vmul.f32 %v4436_v20, %v4436_v20  ;;  %v4464_v28 = vsub.f32 %v4277_v32, %v4356_v11 }
  0xfd   : > { %v4468_v29 = vsub.f32 %v4280_v33, %v4356_v11  ;;  %v497_v6 = vsel %vm258_vm0, %v439_v3, 0.0  ;;  %v441_v10 = vmul.f32 %v4454_v25, %v4454_v25  ;;  %v440_v22 = vmul.f32 %v4450_v24, %v4450_v24 }
  0xfe   : > { %v494_v7 = vsel %vm258_vm0, %v438_v4, 0.0  ;;  %v4478_v32 = vsub.f32 %v4287_v36, %v4356_v11  ;;  %v4482_v33 = vsub.f32 %v4290_v37, %v4356_v11  ;;  %v442_v5 = vmul.f32 %v4464_v28, %v4464_v28 }
  0xff   : > { %474 = vadd.xlane.f32.xlu1 %v473_v38  ;;  %471 = vadd.xlane.f32.xlu0 %v470_v39  ;;  %v503_v23 = vsel %vm258_vm0, %v441_v10, 0.0  ;;  %v500_v1 = vsel %vm258_vm0, %v440_v22, 0.0  ;;  %v443_v26 = vmul.f32 %v4468_v29, %v4468_v29  ;;  %v4492_v36 = vsub.f32 %v4297_v40, %v4356_v11 }
 0x100   : > { %v4496_v37 = vsub.f32 %v4300_v41, %v4356_v11  ;;  %v506_v30 = vsel %vm258_vm0, %v442_v5, 0.0  ;;  %v445_v31 = vmul.f32 %v4482_v33, %v4482_v33  ;;  %v444_v34 = vmul.f32 %v4478_v32, %v4478_v32 }
 0x101   : > { %v509_v27 = vsel %vm258_vm0, %v443_v26, 0.0  ;;  %v4506_v40 = vsub.f32 %v4307_v44, %v4356_v11  ;;  %v4510_v41 = vsub.f32 %v4310_v45, %v4356_v11  ;;  %v446_v42 = vmul.f32 %v4492_v36, %v4492_v36 }
 0x102   : > { %v515_v35 = vsel %vm258_vm0, %v445_v31, 0.0  ;;  %v512_v38 = vsel %vm258_vm0, %v444_v34, 0.0  ;;  %v447_v39 = vmul.f32 %v4496_v37, %v4496_v37  ;;  %v4520_v44 = vsub.f32 %v4317_v48, %v4356_v11 }
 0x103   : > { %480 = vadd.xlane.f32.xlu1 %v479_v46  ;;  %477 = vadd.xlane.f32.xlu0 %v476_v47  ;;  %v4524_v45 = vsub.f32 %v4320_v49, %v4356_v11  ;;  %v518_v46 = vsel %vm258_vm0, %v446_v42, 0.0  ;;  %v449_v47 = vmul.f32 %v4510_v41, %v4510_v41  ;;  %v448_v50 = vmul.f32 %v4506_v40, %v4506_v40 }
 0x104   : > { %v521_v43 = vsel %vm258_vm0, %v447_v39, 0.0  ;;  %v4534_v48 = vsub.f32 %v4327_v52, %v4356_v11  ;;  %v4538_v49 = vsub.f32 %v4330_v53, %v4356_v11  ;;  %v450_v58 = vmul.f32 %v4520_v44, %v4520_v44 }
 0x105   : > { %v527_v51 = vsel %vm258_vm0, %v449_v47, 0.0  ;;  %v4548_v52 = vsub.f32 %v4337_v56, %v4356_v11  ;;  %v4552_v53 = vsub.f32 %v4340_v57, %v4356_v11  ;;  %v4562_v56 = vsub.f32 %v4347_v60, %v4356_v11 }
 0x106   : > { %v452_v3 = vmul.f32 %v4534_v48, %v4534_v48  ;;  %v4566_v57 = vsub.f32 %v4350_v61, %v4356_v11 }
 0x107   : > { %486 = vadd.xlane.f32.xlu1 %v485_v54  ;;  %483 = vadd.xlane.f32.xlu0 %v482_v55  ;;  %v524_v54 = vsel %vm258_vm0, %v448_v50, 0.0  ;;  %v451_v55 = vmul.f32 %v4524_v45, %v4524_v45  ;;  %v454_v10 = vmul.f32 %v4548_v52, %v4548_v52  ;;  %v456_v11 = vmul.f32 %v4562_v56, %v4562_v56 }
 0x108   : > { %v457_v61 = vmul.f32 %v4566_v57, %v4566_v57 }
 0x109   : > { %v533_v59 = vsel %vm258_vm0, %v451_v55, 0.0  ;;  %v542_v60 = vsel %vm258_vm0, %v454_v10, 0.0 }
 0x10b   : > { %492 = vadd.xlane.f32.xlu1 %v491_v62  ;;  %489 = vadd.xlane.f32.xlu0 %v488_v63  ;;  %v530_v62 = vsel %vm258_vm0, %v450_v58, 0.0  ;;  %v453_v63 = vmul.f32 %v4538_v49, %v4538_v49 }
 0x10d   : > { %v539_v4 = vsel %vm258_vm0, %v453_v63, 0.0 }
 0x10f   : > { %498 = vadd.xlane.f32.xlu1 %v497_v6  ;;  %495 = vadd.xlane.f32.xlu0 %v494_v7  ;;  %v536_v6 = vsel %vm258_vm0, %v452_v3, 0.0  ;;  %v455_v7 = vmul.f32 %v4552_v53, %v4552_v53 }
 0x111   : > { %v545_v22 = vsel %vm258_vm0, %v455_v7, 0.0 }
 0x113   : > { %504 = vadd.xlane.f32.xlu1 %v503_v23  ;;  %501 = vadd.xlane.f32.xlu0 %v500_v1  ;;  %v551_v23 = vsel %vm258_vm0, %v457_v61, 0.0  ;;  %v548_v1 = vsel %vm258_vm0, %v456_v11, 0.0 }
 0x117   : > { %510 = vadd.xlane.f32.xlu1 %v509_v27  ;;  %507 = vadd.xlane.f32.xlu0 %v506_v30 }
 0x11b   : > { %516 = vadd.xlane.f32.xlu1 %v515_v35  ;;  %513 = vadd.xlane.f32.xlu0 %v512_v38 }
 0x11f   : > { %522 = vadd.xlane.f32.xlu1 %v521_v43  ;;  %519 = vadd.xlane.f32.xlu0 %v518_v46 }
 0x123   : > { %528 = vadd.xlane.f32.xlu1 %v527_v51  ;;  %525 = vadd.xlane.f32.xlu0 %v524_v54 }
 0x127   : > { %534 = vadd.xlane.f32.xlu1 %v533_v59  ;;  %531 = vadd.xlane.f32.xlu0 %v530_v62 }
 0x12b   : > { %540 = vadd.xlane.f32.xlu1 %v539_v4  ;;  %537 = vadd.xlane.f32.xlu0 %v536_v6 }
 0x12f   : > { %546 = vadd.xlane.f32.xlu1 %v545_v22  ;;  %543 = vadd.xlane.f32.xlu0 %v542_v60  ;;  %v3243_v22 = vld [vmem:[%s5771_s3 + $0x2] sm:$0x3]  ;;  %v3310_v60 = vld [vmem:[%s5771_s3 + $0x8] sm:$0x3] }
 0x130   : > { %4117 = vmatprep.subr.msk.bf16.mxu1 %vm1151_vm1, %v3243_v22  ;;  %4121 = vmatprep.subr.msk.bf16.mxu0 %vm1151_vm1, %v3310_v60  ;;  %v1153_v11 = vsel %vm1151_vm1, %v3243_v22, 0 }
 0x131   : > { %3554 = vmatpush3.bf16.msra.mxu1 %v1153_v11 }
 0x133   : > { %552 = vadd.xlane.f32.xlu1 %v551_v23  ;;  %549 = vadd.xlane.f32.xlu0 %v548_v1  ;;  %v4592_v23 = vsel %vm1151_vm1, %v3310_v60, 0 }
 0x134   : > { %5815 = vst [vmem:[#allocation2_spill] sm:$0xff] %v4592_v23  ;;  %3690 = vmatpush3.bf16.msra.mxu0 %v4592_v23 }
 0x184   : > { %v463_v26 = vpop.xlane.xlu1 %462  ;;  %v460_v5 = vpop.xlane.xlu0 %459 }
 0x185   : > { %v554_v27 = vadd.f32 %v463_v26, %v460_v5 }
 0x188   : > { %v469_v30 = vpop.xlane.xlu1 %468  ;;  %v466_v31 = vpop.xlane.xlu0 %465 }
 0x189   : > { %v555_v34 = vadd.f32 %v554_v27, %v466_v31 }
 0x18b   : > { %v556_v35 = vadd.f32 %v555_v34, %v469_v30 }
 0x18c   : > { %v475_v38 = vpop.xlane.xlu1 %474  ;;  %v472_v39 = vpop.xlane.xlu0 %471 }
 0x18d   : > { %v557_v42 = vadd.f32 %v556_v35, %v472_v39  ;;  %v952_v35 = vld [vmem:[%s5771_s3] sm:$0x3] }
 0x18e   : > { %4118 = vmatprep.subr.msk.bf16.mxu1 %vm1151_vm1, %v952_v35 }
 0x18f   : > { %v558_v43 = vadd.f32 %v557_v42, %v475_v38  ;;  %v3327_v38 = vld [vmem:[%s5771_s3 + $0xa] sm:$0x3] }
 0x190   : > { %v481_v46 = vpop.xlane.xlu1 %480  ;;  %v478_v47 = vpop.xlane.xlu0 %477  ;;  %4123 = vmatprep.subr.msk.bf16.mxu0 %vm1151_vm1, %v3327_v38 }
 0x191   : > { %v559_v50 = vadd.f32 %v558_v43, %v478_v47 }
 0x193   : > { %v560_v51 = vadd.f32 %v559_v50, %v481_v46 }
 0x194   : > { %v487_v54 = vpop.xlane.xlu1 %486  ;;  %v484_v55 = vpop.xlane.xlu0 %483 }
 0x195   : > { %v561_v58 = vadd.f32 %v560_v51, %v484_v55 }
 0x197   : > { %v562_v59 = vadd.f32 %v561_v58, %v487_v54 }
 0x198   : > { %v493_v62 = vpop.xlane.xlu1 %492  ;;  %v490_v63 = vpop.xlane.xlu0 %489 }
 0x199   : > { %v563_v3 = vadd.f32 %v562_v59, %v490_v63 }
 0x19b   : > { %v564_v4 = vadd.f32 %v563_v3, %v493_v62 }
 0x19c   : > { %v499_v6 = vpop.xlane.xlu1 %498  ;;  %v496_v7 = vpop.xlane.xlu0 %495 }
 0x19d   : > { %v565_v10 = vadd.f32 %v564_v4, %v496_v7 }
 0x19f   : > { %v566_v61 = vadd.f32 %v565_v10, %v499_v6 }
 0x1a0   : > { %v505_v1 = vpop.xlane.xlu1 %504  ;;  %v502_v26 = vpop.xlane.xlu0 %501 }
 0x1a1   : > { %v567_v5 = vadd.f32 %v566_v61, %v502_v26 }
 0x1a3   : > { %v568_v27 = vadd.f32 %v567_v5, %v505_v1 }
 0x1a4   : > { %v511_v30 = vpop.xlane.xlu1 %510  ;;  %v508_v31 = vpop.xlane.xlu0 %507 }
 0x1a5   : > { %v569_v34 = vadd.f32 %v568_v27, %v508_v31 }
 0x1a7   : > { %v570_v39 = vadd.f32 %v569_v34, %v511_v30 }
 0x1a8   : > { %v517_v42 = vpop.xlane.xlu1 %516  ;;  %v514_v43 = vpop.xlane.xlu0 %513 }
 0x1a9   : > { %v571_v46 = vadd.f32 %v570_v39, %v514_v43 }
 0x1ab   : > { %v572_v47 = vadd.f32 %v571_v46, %v517_v42 }
 0x1ac   : > { %v523_v50 = vpop.xlane.xlu1 %522  ;;  %v520_v51 = vpop.xlane.xlu0 %519 }
 0x1ad   : > { %v573_v54 = vadd.f32 %v572_v47, %v520_v51 }
 0x1af   : > { %v574_v55 = vadd.f32 %v573_v54, %v523_v50 }
 0x1b0   : > { %v529_v58 = vpop.xlane.xlu1 %528  ;;  %v526_v59 = vpop.xlane.xlu0 %525 }
 0x1b1   : > { %v575_v62 = vadd.f32 %v574_v55, %v526_v59 }
 0x1b3   : > { %v576_v63 = vadd.f32 %v575_v62, %v529_v58 }
 0x1b4   : > { %v535_v3 = vpop.xlane.xlu1 %534  ;;  %v532_v4 = vpop.xlane.xlu0 %531 }
 0x1b5   : > { %v577_v6 = vadd.f32 %v576_v63, %v532_v4  ;;  %v4606_v4 = vld [vmem:[%s5771_s3 + $0xc] sm:$0x3] }
 0x1b7   : > { %v578_v7 = vadd.f32 %v577_v6, %v535_v3 }
 0x1b8   : > { %v541_v10 = vpop.xlane.xlu1 %540  ;;  %v538_v22 = vpop.xlane.xlu0 %537 }
 0x1b9   : > { %v579_v60 = vadd.f32 %v578_v7, %v538_v22  ;;  %v4610_v7 = vsel %vm1151_vm1, %v952_v35, 0  ;;  %v4617_v22 = vsel %vm1151_vm1, %v4606_v4, 0 }
 0x1bb   : > { %v580_v61 = vadd.f32 %v579_v60, %v541_v10  ;;  %v4613_v10 = vsel %vm1151_vm1, %v3327_v38, 0 }
 0x1bc   : > { %v547_v11 = vpop.xlane.xlu1 %546  ;;  %v544_v1 = vpop.xlane.xlu0 %543 }
 0x1bd   : > { %v581_v26 = vadd.f32 %v580_v61, %v544_v1 }
 0x1bf   : > { %v582_v5 = vadd.f32 %v581_v26, %v547_v11 }
 0x1c0   : > { %v550_v27 = vpop.xlane.xlu0 %549  ;;  %v553_v31 = vpop.xlane.xlu1 %552 }
 0x1c1   : > { %v583_v30 = vadd.f32 %v582_v5, %v550_v27 }
 0x1c3   : > { %v584_v34 = vadd.f32 %v583_v30, %v553_v31 }
 0x1c5   : > { %v585_v39 = vrot.slane %v584_v34, 4 }
 0x1c7   : > { %v586_v42 = vadd.f32 %v585_v39, %v584_v34 }
 0x1c9   : > { %v587_v43 = vrot.slane %v586_v42, 2 }
 0x1cb   : > { %v588_v46 = vadd.f32 %v587_v43, %v586_v42 }
 0x1cd   : > { %v589_v47 = vrot.slane %v588_v46, 1 }
 0x1cf   : > { %v590_v50 = vadd.f32 %v589_v47, %v588_v46 }
 0x1d1   : > { %v592_v51 = vmul.f32 0.0009775171, %v590_v50 }
 0x1d3   : > { %4135 = vrsqrt.f32 %v592_v51  ;;  %vm595_vm2 = vcmp.eq.f32.partialorder %v592_v51, inf  ;;  %v598_v59 = vand.u32 2147483648, %v592_v51  ;;  %vm597_vm3 = vcmp.eq.f32.partialorder %v592_v51, 0.0 }
 0x1dd   : > { %v4136_v54 = vpop.eup %4135 }
 0x1de   : > { %v594_v55 = vmul.f32 %v4136_v54, %v592_v51 }
 0x1e0   : > { %v596_v58 = vsel %vm595_vm2, %v592_v51, %v594_v55 }
 0x1e1   : > { %v599_v62 = vsel %vm597_vm3, %v598_v59, %v596_v58 }
 0x1e2   : > { %v600_v63 = vadd.f32 1e-05, %v599_v62 }
 0x1e4   : > { %4137 = vrcp.f32 %v600_v63 }
 0x1ee   : > { %v4138_v3 = vpop.eup %4137 }
 0x1ef   : > { %v602_v6 = vmul.f32 %v4138_v3, %v4360_v14  ;;  %v603_v60 = vmul.f32 %v4138_v3, %v4364_v15  ;;  %v604_v61 = vmul.f32 %v4138_v3, %v4368_v18  ;;  %v632_v11 = vmul.f32 %v4138_v3, %v4562_v56  ;;  %v3241_v14 = vld [vmem:[%s5769_s1] ss:$0 sm:$0xff] }
 0x1f0   : > { %v633_v1 = vmul.f32 %v4138_v3, %v4566_v57  ;;  %v605_v35 = vmul.f32 %v4138_v3, %v4372_v19  ;;  %v606_v38 = vmul.f32 %v4138_v3, %v4380_v0  ;;  %v607_v26 = vmul.f32 %v4138_v3, %v4384_v2 }
 0x1f1   : > { %v608_v5 = vmul.f32 %v4138_v3, %v4394_v8  ;;  %v609_v15 = vmul.f32 %v4138_v3, %v4398_v9  ;;  %v610_v18 = vmul.f32 %v4138_v3, %v4408_v12  ;;  %v611_v56 = vmul.f32 %v4138_v3, %v4412_v13 }
 0x1f2   : > { %v612_v57 = vmul.f32 %v4138_v3, %v4422_v16  ;;  %v613_v27 = vmul.f32 %v4138_v3, %v4426_v17  ;;  %v614_v30 = vmul.f32 %v4138_v3, %v4436_v20  ;;  %v615_v19 = vmul.f32 %v4138_v3, %v4440_v21 }
 0x1f3   : > { %v616_v0 = vmul.f32 %v4138_v3, %v4450_v24  ;;  %v617_v2 = vmul.f32 %v4138_v3, %v4454_v25  ;;  %v618_v8 = vmul.f32 %v4138_v3, %v4464_v28  ;;  %v671_v31 = vmul.f32 %v3241_v14, %v632_v11 }
 0x1f4   : > { %v672_v9 = vmul.f32 %v3241_v14, %v633_v1  ;;  %v619_v12 = vmul.f32 %v4138_v3, %v4468_v29  ;;  %v620_v13 = vmul.f32 %v4138_v3, %v4478_v32  ;;  %v621_v16 = vmul.f32 %v4138_v3, %v4482_v33 }
 0x1f5   : > { %v622_v17 = vmul.f32 %v4138_v3, %v4492_v36  ;;  %v623_v20 = vmul.f32 %v4138_v3, %v4496_v37  ;;  %v624_v21 = vmul.f32 %v4138_v3, %v4506_v40  ;;  %v625_v24 = vmul.f32 %v4138_v3, %v4510_v41  ;;  %v3242_v37 = vld [vmem:[%s5770_s2] ss:$0 sm:$0xff] }
 0x1f6   : > { %v626_v25 = vmul.f32 %v4138_v3, %v4520_v44  ;;  %v627_v28 = vmul.f32 %v4138_v3, %v4524_v45  ;;  %v628_v34 = vmul.f32 %v4138_v3, %v4534_v48  ;;  %v629_v29 = vmul.f32 %v4138_v3, %v4538_v49 }
 0x1f7   : > { %v630_v32 = vmul.f32 %v4138_v3, %v4548_v52  ;;  %v631_v33 = vmul.f32 %v4138_v3, %v4552_v53  ;;  %v641_v39 = vmul.f32 %v3241_v14, %v602_v6  ;;  %v642_v36 = vmul.f32 %v3241_v14, %v603_v60 }
 0x1f8   : > { %v643_v42 = vmul.f32 %v3241_v14, %v604_v61  ;;  %v644_v40 = vmul.f32 %v3241_v14, %v605_v35  ;;  %v645_v41 = vmul.f32 %v3241_v14, %v606_v38  ;;  %v646_v44 = vmul.f32 %v3241_v14, %v607_v26 }
 0x1f9   : > { %v647_v43 = vmul.f32 %v3241_v14, %v608_v5  ;;  %v648_v45 = vmul.f32 %v3241_v14, %v609_v15  ;;  %v649_v46 = vmul.f32 %v3241_v14, %v610_v18  ;;  %v650_v48 = vmul.f32 %v3241_v14, %v611_v56 }
 0x1fa   : > { %v651_v47 = vmul.f32 %v3241_v14, %v612_v57  ;;  %v652_v49 = vmul.f32 %v3241_v14, %v613_v27  ;;  %v653_v50 = vmul.f32 %v3241_v14, %v614_v30  ;;  %v654_v52 = vmul.f32 %v3241_v14, %v615_v19 }
 0x1fb   : > { %v655_v51 = vmul.f32 %v3241_v14, %v616_v0  ;;  %v656_v53 = vmul.f32 %v3241_v14, %v617_v2  ;;  %v657_v54 = vmul.f32 %v3241_v14, %v618_v8  ;;  %v4656_v55 = vadd.f32 %v3242_v37, %v671_v31 }
 0x1fc   : > { %v4658_v58 = vadd.f32 %v3242_v37, %v672_v9  ;;  %v658_v59 = vmul.f32 %v3241_v14, %v619_v12  ;;  %v659_v62 = vmul.f32 %v3241_v14, %v620_v13  ;;  %v660_v63 = vmul.f32 %v3241_v14, %v621_v16 }
 0x1fd   : > { %v661_v3 = vmul.f32 %v3241_v14, %v622_v17  ;;  %v662_v6 = vmul.f32 %v3241_v14, %v623_v20  ;;  %v663_v60 = vmul.f32 %v3241_v14, %v624_v21  ;;  %v664_v61 = vmul.f32 %v3241_v14, %v625_v24 }
 0x1fe   : > { %5816 = vst [vmem:[#allocation3_spill] sm:$0xff] %v4658_v58  ;;  %v665_v11 = vmul.f32 %v3241_v14, %v626_v25  ;;  %v666_v1 = vmul.f32 %v3241_v14, %v627_v28  ;;  %v667_v35 = vmul.f32 %v3241_v14, %v628_v34  ;;  %v668_v38 = vmul.f32 %v3241_v14, %v629_v29 }
 0x1ff   : > { %v669_v26 = vmul.f32 %v3241_v14, %v630_v32  ;;  %v670_v5 = vmul.f32 %v3241_v14, %v631_v33  ;;  %v4660_v15 = vadd.f32 %v3242_v37, %v641_v39  ;;  %v4662_v18 = vadd.f32 %v3242_v37, %v642_v36 }
 0x200   : > { %v4664_v56 = vadd.f32 %v3242_v37, %v643_v42  ;;  %v4666_v57 = vadd.f32 %v3242_v37, %v644_v40  ;;  %v4668_v27 = vadd.f32 %v3242_v37, %v645_v41  ;;  %v4670_v30 = vadd.f32 %v3242_v37, %v646_v44 }
 0x201   : > { %v4672_v19 = vadd.f32 %v3242_v37, %v647_v43  ;;  %v4674_v0 = vadd.f32 %v3242_v37, %v648_v45  ;;  %v4676_v2 = vadd.f32 %v3242_v37, %v649_v46  ;;  %v4678_v8 = vadd.f32 %v3242_v37, %v650_v48 }
 0x202   : > { %v4680_v14 = vadd.f32 %v3242_v37, %v651_v47  ;;  %v4682_v31 = vadd.f32 %v3242_v37, %v652_v49  ;;  %v4684_v9 = vadd.f32 %v3242_v37, %v653_v50  ;;  %v4686_v12 = vadd.f32 %v3242_v37, %v654_v52 }
 0x203   : > { %v4688_v13 = vadd.f32 %v3242_v37, %v655_v51  ;;  %v4690_v16 = vadd.f32 %v3242_v37, %v656_v53  ;;  %v4692_v17 = vadd.f32 %v3242_v37, %v657_v54  ;;  %v4694_v20 = vadd.f32 %v3242_v37, %v658_v59 }
 0x204   : > { %v4696_v21 = vadd.f32 %v3242_v37, %v659_v62  ;;  %v4698_v24 = vadd.f32 %v3242_v37, %v660_v63  ;;  %v4700_v25 = vadd.f32 %v3242_v37, %v661_v3  ;;  %v4702_v28 = vadd.f32 %v3242_v37, %v662_v6 }
 0x205   : > { %v4704_v34 = vadd.f32 %v3242_v37, %v663_v60  ;;  %v4706_v29 = vadd.f32 %v3242_v37, %v664_v61  ;;  %v4708_v32 = vadd.f32 %v3242_v37, %v665_v11  ;;  %v4710_v33 = vadd.f32 %v3242_v37, %v666_v1 }
 0x206   : > { %v4712_v39 = vadd.f32 %v3242_v37, %v667_v35  ;;  %v4714_v36 = vadd.f32 %v3242_v37, %v668_v38  ;;  %v4716_v42 = vadd.f32 %v3242_v37, %v669_v26  ;;  %v4718_v40 = vadd.f32 %v3242_v37, %v670_v5 }
 0x207   : > { %v712_v41 = vmax.f32 %v4660_v15, 0.0  ;;  %v713_v44 = vmax.f32 %v4662_v18, 0.0  ;;  %v714_v43 = vmax.f32 %v4664_v56, 0.0  ;;  %v715_v45 = vmax.f32 %v4666_v57, 0.0 }
 0x208   : > { %v716_v46 = vmax.f32 %v4668_v27, 0.0  ;;  %v717_v48 = vmax.f32 %v4670_v30, 0.0  ;;  %v718_v47 = vmax.f32 %v4672_v19, 0.0  ;;  %v719_v49 = vmax.f32 %v4674_v0, 0.0 }
 0x209   : > { %v720_v37 = vmax.f32 %v4676_v2, 0.0  ;;  %v721_v50 = vmax.f32 %v4678_v8, 0.0  ;;  %v5774_v52 = vmax.f32 %v4680_v14, 0.0  ;;  %v723_v51 = vmax.f32 %v4682_v31, 0.0 }
 0x20a   : > { %v5775_v53 = vmax.f32 %v4684_v9, 0.0  ;;  %v742_v61 = vmax.f32 %v4656_v55, 0.0  ;;  %v777_v57 = vrot.slane %v712_v41, 7  ;;  %v778_v27 = vrot.slane %v713_v44, 7 }
 0x20b   : > { %v780_v30 = vrot.slane %v714_v43, 7  ;;  %v781_v19 = vrot.slane %v715_v45, 7  ;;  %v783_v0 = vrot.slane %v716_v46, 7  ;;  %v784_v8 = vrot.slane %v717_v48, 7 }
 0x20c   : > { %v4751_v2 = vrot.slane %v742_v61, 7  ;;  %v786_v31 = vrot.slane %v718_v47, 7  ;;  %v787_v26 = vrot.slane %v719_v49, 7  ;;  %v873_v38 = vrot.slane %v713_v44, 6 }
 0x20d   : > { %v789_v5 = vrot.slane %v720_v37, 7  ;;  %v790_v35 = vrot.slane %v721_v50, 7  ;;  %v4755_v18 = vrot.slane %v5774_v52, 7  ;;  %v4757_v56 = vrot.slane %v723_v51, 7 }
 0x20e   : > { %5817 = vst [vmem:[#allocation4_spill] sm:$0xff] %v4751_v2  ;;  %v4761_v55 = vrot.slane %v5775_v53, 7  ;;  %v874_v15 = vrot.slane %v715_v45, 6  ;;  %v875_v1 = vrot.slane %v717_v48, 6  ;;  %v876_v11 = vrot.slane %v719_v49, 6 }
 0x20f   : > { %v877_v60 = vrot.slane %v721_v50, 6  ;;  %v4763_v6 = vrot.slane %v723_v51, 6  ;;  %v4766_v44 = vsel %vm776_vm4, %v714_v43, %v780_v30  ;;  %v4770_v3 = vsel %vm776_vm4, %v742_v61, %v4751_v2 }
 0x210   : > { %5818 = vst [vmem:[#allocation5_spill] sm:$0xff] %v4770_v3  ;;  %v4773_v52 = vsel %vm776_vm4, %v777_v57, %v778_v27  ;;  %v4776_v63 = vsel %vm776_vm4, %v712_v41, %v777_v57  ;;  %v4779_v45 = vsel %vm776_vm4, %v778_v27, %v873_v38  ;;  %v4782_v48 = vsel %vm776_vm4, %v780_v30, %v781_v19 }
 0x211   : > { %v4785_v49 = vsel %vm776_vm4, %v716_v46, %v783_v0  ;;  %v984_v43 = vrot.slane %v4776_v63, 1  ;;  %v985_v50 = vrot.slane %v4773_v52, 1  ;;  %v987_v51 = vrot.slane %v4779_v45, 1 }
 0x212   : > { %v4791_v61 = vsel %vm776_vm4, %v718_v47, %v786_v31  ;;  %v4794_v41 = vsel %vm776_vm4, %v781_v19, %v874_v15  ;;  %v989_v38 = vrot.slane %v4766_v44, 1  ;;  %v990_v57 = vrot.slane %v4782_v48, 1 }
 0x213   : > { %v4799_v27 = vsel %vm776_vm4, %v720_v37, %v789_v5  ;;  %v986_v46 = vsel %vm983_vm5, %v984_v43, %v985_v50  ;;  %v988_v30 = vsel %vm983_vm5, %v985_v50, %v987_v51  ;;  %v992_v53 = vrot.slane %v4794_v41, 1 }
 0x214   : > { %v1089_v62 = vpack.c.bf16 %v988_v30, %v986_v46  ;;  %v991_v47 = vsel %vm983_vm5, %v989_v38, %v990_v57  ;;  %v4806_v59 = vsel %vm776_vm4, %v783_v0, %v784_v8  ;;  %v4809_v15 = vsel %vm776_vm4, %v784_v8, %v875_v1 }
 0x215   : > { %v993_v19 = vsel %vm983_vm5, %v990_v57, %v992_v53  ;;  %v994_v37 = vrot.slane %v4785_v49, 1  ;;  %v995_v54 = vrot.slane %v4806_v59, 1  ;;  %v997_v43 = vrot.slane %v4809_v15, 1 }
 0x216   : > { %3555 = vmatprep.mubr.msk.bf16.mxu1 %vm258_vm0, %v1089_v62  ;;  %3691 = vmatprep.mubr.msk.bf16.mxu0 %vm258_vm0, %v1089_v62  ;;  %v4817_v50 = vpack.c.bf16 %v993_v19, %v991_v47  ;;  %v4820_v0 = vsel %vm776_vm4, %v786_v31, %v787_v26  ;;  %v4823_v1 = vsel %vm776_vm4, %v787_v26, %v876_v11  ;;  %v999_v53 = vrot.slane %v4791_v61, 1 }
 0x217   : > { %3556 = vmatmul.mubr.msk.bf16.vlgmr.msra.gmra.mrb[0].mxu1 %vm258_vm0, %v1089_v62  ;;  %v996_v8 = vsel %vm983_vm5, %v994_v37, %v995_v54  ;;  %v998_v51 = vsel %vm983_vm5, %v995_v54, %v997_v43  ;;  %v1000_v38 = vrot.slane %v4820_v0, 1  ;;  %v1002_v57 = vrot.slane %v4823_v1, 1  ;;  %v4846_v54 = vld [vmem:[%s5771_s3 + $0x4] sm:$0x3] }
 0x218   : > { %5819 = vst [vmem:[#allocation6_spill] sm:$0xff] %v4817_v50  ;;  %3588 = vmatpush3.bf16.msra.mxu1 %v4610_v7  ;;  %3692 = vmatmul.mubr.msk.bf16.vlgmr.msra.gmra.mrb[0].mxu0 %vm258_vm0, %v4817_v50  ;;  %v4834_v31 = vpack.c.bf16 %v998_v51, %v996_v8  ;;  %v4837_v11 = vsel %vm776_vm4, %v789_v5, %v790_v35  ;;  %v1004_v26 = vrot.slane %v4799_v27, 1  ;;  %5821 = vst [vmem:[#allocation8_spill] sm:$0xff] %v4846_v54 }
 0x219   : > { %v4840_v62 = vsel %vm776_vm4, %v790_v35, %v877_v60  ;;  %v5822_v7 = vmax.f32 %v4686_v12, 0.0  ;;  %3724 = vmatpush3.bf16.msra.mxu0 %v4613_v10  ;;  %3559 = vmatprep.mubr.msk.bf16.mxu1 %vm258_vm0, %v4817_v50  ;;  %v1005_v60 = vrot.slane %v4837_v11, 1  ;;  %v5824_v19 = vmax.f32 %v4688_v13, 0.0 }
 0x21a   : > { %5820 = vst [vmem:[#allocation7_spill] sm:$0xff] %v4834_v31  ;;  %v1007_v35 = vrot.slane %v4840_v62, 1  ;;  %v5825_v43 = vmax.f32 %v4690_v16, 0.0  ;;  %v5826_v12 = vmax.f32 %v4692_v17, 0.0  ;;  %3695 = vmatprep.mubr.msk.bf16.mxu0 %vm258_vm0, %v4834_v31  ;;  %4124 = vmatprep.subr.msk.bf16.mxu0 %vm1151_vm1, %v4606_v4  ;;  %v5827_v10 = vmax.f32 %v4694_v20, 0.0 }
 0x21b   : > { %v796_v46 = vrot.slane %v5822_v7, 7  ;;  %v5823_v30 = vmov %v5822_v7  ;;  %v798_v37 = vrot.slane %v5824_v19, 7  ;;  %4119 = vmatprep.subr.msk.bf16.mxu1 %vm1151_vm1, %v4846_v54  ;;  %v1006_v5 = vsel %vm983_vm5, %v1004_v26, %v1005_v60 }
 0x21c   : > { %v879_v47 = vrot.slane %v5823_v30, 6  ;;  %v799_v8 = vrot.slane %v5825_v43, 7  ;;  %v4864_v51 = vrot.slane %v5826_v12, 7  ;;  %v4872_v7 = vrot.slane %v5827_v10, 7 }
 0x21d   : > { %v5828_v30 = vmax.f32 %v4680_v14, 0.0  ;;  %v1001_v43 = vsel %vm983_vm5, %v999_v53, %v1000_v38  ;;  %v1003_v12 = vsel %vm983_vm5, %v1000_v38, %v1002_v57  ;;  %v1008_v4 = vsel %vm983_vm5, %v1005_v60, %v1007_v35 }
 0x21e   : > { %v4889_v10 = vsel %vm776_vm4, %v4755_v18, %v4757_v56  ;;  %v4894_v14 = vsel %vm776_vm4, %v4757_v56, %v4763_v6  ;;  %v5832_v53 = vmax.f32 %v4696_v21, 0.0  ;;  %v5833_v57 = vmax.f32 %v4684_v9, 0.0 }
 0x21f   : > { %v4878_v19 = vsel %vm776_vm4, %v5828_v30, %v4755_v18  ;;  %5830 = vst [vmem:[#allocation10_spill] sm:$0xff] %v4889_v10  ;;  %5831 = vst [vmem:[#allocation11_spill] sm:$0xff] %v4894_v14  ;;  %v4908_v60 = vsel %vm776_vm4, %v4761_v55, %v796_v46  ;;  %v4911_v18 = vsel %vm776_vm4, %v796_v46, %v879_v47  ;;  %v5837_v6 = vmax.f32 %v4698_v24, 0.0 }
 0x220   : > { %5829 = vst [vmem:[#allocation9_spill] sm:$0xff] %v4878_v19  ;;  %v4898_v38 = vrot.slane %v5832_v53, 7  ;;  %v4904_v26 = vsel %vm776_vm4, %v5833_v57, %v4761_v55  ;;  %5835 = vst [vmem:[#allocation13_spill] sm:$0xff] %v4908_v60  ;;  %v5838_v35 = vmax.f32 %v4700_v25, 0.0  ;;  %v5839_v9 = vmax.f32 %v4690_v16, 0.0  ;;  %3560 = vmatmul.mubr.msk.bf16.gmra.mrb[4].mxu1 %vm258_vm0, %v4834_v31 }
 0x221   : > { %5834 = vst [vmem:[#allocation12_spill] sm:$0xff] %v4904_v26  ;;  %5836 = vst [vmem:[#allocation14_spill] sm:$0xff] %v4911_v18  ;;  %v4915_v56 = vrot.slane %v5837_v6, 7  ;;  %v4923_v57 = vpack.c.bf16 %v1003_v12, %v1001_v43  ;;  %v4927_v55 = vpack.c.bf16 %v1008_v4, %v1006_v5  ;;  %v1009_v46 = vrot.slane %v4878_v19, 1 }
 0x222   : > { %v4919_v30 = vrot.slane %v5838_v35, 7  ;;  %v880_v53 = vrot.slane %v5839_v9, 6  ;;  %v1010_v47 = vrot.slane %v4889_v10, 1  ;;  %v1012_v6 = vrot.slane %v4894_v14, 1 }
 0x223   : > { %5840 = vst [vmem:[#allocation15_spill] sm:$0xff] %v4923_v57  ;;  %5841 = vst [vmem:[#allocation16_spill] sm:$0xff] %v4927_v55  ;;  %v5842_v23 = vmax.f32 %v4702_v28, 0.0  ;;  %3696 = vmatmul.mubr.msk.bf16.gmra.mrb[4].mxu0 %vm258_vm0, %v4923_v57  ;;  %3563 = vmatprep.mubr.msk.bf16.mxu1 %vm258_vm0, %v4923_v57  ;;  %v1014_v16 = vrot.slane %v4904_v26, 1  ;;  %v1015_v5 = vrot.slane %v4908_v60, 1  ;;  %v1017_v43 = vrot.slane %v4911_v18, 1 }
 0x224   : > { %v5843_v12 = vmax.f32 %v4704_v34, 0.0  ;;  %v5844_v9 = vmax.f32 %v4706_v29, 0.0  ;;  %v5845_v31 = vmax.f32 %v4708_v32, 0.0  ;;  %v5846_v57 = vmax.f32 %v4710_v33, 0.0  ;;  %3699 = vmatprep.mubr.msk.bf16.mxu0 %vm258_vm0, %v4927_v55 }
 0x225   : > { %v4934_v35 = vrot.slane %v5842_v23, 7  ;;  %v5847_v3 = vmax.f32 %v4712_v39, 0.0  ;;  %v5848_v2 = vmax.f32 %v4688_v13, 0.0  ;;  %v4974_v58 = vsel %vm776_vm4, %v799_v8, %v880_v53 }
 0x226   : > { %v4945_v4 = vrot.slane %v5843_v12, 7  ;;  %v4949_v23 = vrot.slane %v5844_v9, 7  ;;  %v4953_v50 = vrot.slane %v5845_v31, 7  ;;  %v4957_v54 = vrot.slane %v5846_v57, 7  ;;  %5849 = vst [vmem:[#allocation17_spill] sm:$0xff] %v4974_v58 }
 0x227   : > { %v4963_v12 = vrot.slane %v5847_v3, 7  ;;  %v4968_v9 = vsel %vm776_vm4, %v5848_v2, %v798_v37  ;;  %v4971_v31 = vsel %vm776_vm4, %v798_v37, %v799_v8  ;;  %v5850_v57 = vmax.f32 %v4714_v36, 0.0 }
 0x228   : > { %v5851_v60 = vmax.f32 %v4716_v42, 0.0  ;;  %v1011_v3 = vsel %vm983_vm5, %v1009_v46, %v1010_v47  ;;  %v1013_v13 = vsel %vm983_vm5, %v1010_v47, %v1012_v6  ;;  %v5852_v2 = vmax.f32 %v4718_v40, 0.0  ;;  %3564 = vmatmul.mubr.msk.bf16.gmra.mrb[8].mxu1 %vm258_vm0, %v4927_v55  ;;  %v5883_v55 = vld [vmem:[#allocation14_spill] sm:$0xff] }
 0x229   : > { %v4978_v18 = vrot.slane %v5850_v57, 7  ;;  %v5854_v37 = vmax.f32 %v4694_v20, 0.0  ;;  %v1016_v53 = vsel %vm983_vm5, %v1014_v16, %v1015_v5  ;;  %v1018_v57 = vsel %vm983_vm5, %v1015_v5, %v1017_v43 }
 0x22a   : > { %v4982_v26 = vrot.slane %v5851_v60, 7  ;;  %v4988_v14 = vrot.slane %v5852_v2, 7  ;;  %v5855_v10 = vmax.f32 %v4698_v24, 0.0  ;;  %v1019_v60 = vrot.slane %v4968_v9, 1 }
 0x22b   : > { %v881_v8 = vrot.slane %v5854_v37, 6  ;;  %v1020_v46 = vrot.slane %v4971_v31, 1  ;;  %v1022_v47 = vrot.slane %v4974_v58, 1  ;;  %v5856_v6 = vmax.f32 %v4702_v28, 0.0 }
 0x22c   : > { %5853 = vst [vmem:[#allocation18_spill] sm:$0xff] %v4988_v14  ;;  %v882_v19 = vrot.slane %v5855_v10, 6  ;;  %v5857_v14 = vmax.f32 %v4706_v29, 0.0  ;;  %v5858_v37 = vmax.f32 %v4710_v33, 0.0  ;;  %v5007_v5 = vpack.c.bf16 %v1013_v13, %v1011_v3 }
 0x22d   : > { %v883_v2 = vrot.slane %v5856_v6, 6  ;;  %v5860_v24 = vmax.f32 %v4714_v36, 0.0  ;;  %v5861_v43 = vmax.f32 %v4692_v17, 0.0  ;;  %v5862_v28 = vmax.f32 %v4696_v21, 0.0 }
 0x22e   : > { %v884_v20 = vrot.slane %v5857_v14, 6  ;;  %v5005_v16 = vrot.slane %v5858_v37, 6  ;;  %5859 = vst [vmem:[#allocation19_spill] sm:$0xff] %v5007_v5  ;;  %v5027_v33 = vpack.c.bf16 %v1018_v57, %v1016_v53  ;;  %v5864_v36 = vmax.f32 %v4700_v25, 0.0  ;;  %3700 = vmatmul.mubr.msk.bf16.gmra.mrb[8].mxu0 %vm258_vm0, %v5007_v5  ;;  %3567 = vmatprep.mubr.msk.bf16.mxu1 %vm258_vm0, %v5007_v5 }
 0x22f   : > { %v5011_v10 = vrot.slane %v5860_v24, 6  ;;  %v5017_v58 = vsel %vm776_vm4, %v5861_v43, %v4864_v51  ;;  %v5023_v29 = vsel %vm776_vm4, %v5862_v28, %v4898_v38  ;;  %v1529_v17 = vrot.slane %v4779_v45, 2 }
 0x230   : > { %5863 = vst [vmem:[#allocation20_spill] sm:$0xff] %v5027_v33  ;;  %v5033_v14 = vsel %vm776_vm4, %v5864_v36, %v4919_v30  ;;  %v1526_v21 = vrot.slane %v4776_v63, 2  ;;  %v1527_v3 = vrot.slane %v4773_v52, 2  ;;  %v5865_v13 = vmax.f32 %v4704_v34, 0.0  ;;  %3703 = vmatprep.mubr.msk.bf16.mxu0 %vm258_vm0, %v5027_v33  ;;  %3568 = vmatmul.mubr.msk.bf16.gmra.mrb[12].mxu1 %vm258_vm0, %v5027_v33 }
 0x231   : > { %v1021_v45 = vsel %vm983_vm5, %v1019_v60, %v1020_v46  ;;  %v1023_v53 = vsel %vm983_vm5, %v1020_v46, %v1022_v47  ;;  %v5055_v57 = vsel %vm776_vm4, %v4864_v51, %v4872_v7  ;;  %v5866_v6 = vmax.f32 %v4708_v32, 0.0 }
 0x232   : > { %v5046_v25 = vsel %vm776_vm4, %v5865_v13, %v4945_v4  ;;  %v1531_v37 = vrot.slane %v4766_v44, 2  ;;  %v1532_v24 = vrot.slane %v4782_v48, 2  ;;  %v5067_v60 = vsel %vm776_vm4, %v4872_v7, %v881_v8 }
 0x233   : > { %v5061_v34 = vsel %vm776_vm4, %v5866_v6, %v4953_v50  ;;  %v1534_v46 = vrot.slane %v4794_v41, 2  ;;  %v1024_v47 = vrot.slane %v5017_v58, 1  ;;  %v5074_v51 = vsel %vm776_vm4, %v4898_v38, %v4915_v56 }
 0x234   : > { %v5078_v32 = vsel %vm776_vm4, %v4915_v56, %v882_v19  ;;  %v5080_v43 = vpack.c.bf16 %v1023_v53, %v1021_v45  ;;  %v1528_v28 = vsel %vm1525_vm6, %v1526_v21, %v1527_v3  ;;  %v1530_v7 = vsel %vm1525_vm6, %v1527_v3, %v1529_v17 }
 0x235   : > { %v1025_v8 = vrot.slane %v5055_v57, 1  ;;  %v1027_v41 = vrot.slane %v5067_v60, 1  ;;  %v1029_v36 = vrot.slane %v5023_v29, 1  ;;  %v5090_v38 = vsel %vm776_vm4, %v4919_v30, %v4934_v35 }
 0x236   : > { %5867 = vst [vmem:[#allocation21_spill] sm:$0xff] %v5080_v43  ;;  %v5094_v19 = vsel %vm776_vm4, %v4934_v35, %v883_v2  ;;  %v1030_v56 = vrot.slane %v5074_v51, 1  ;;  %v1032_v21 = vrot.slane %v5078_v32, 1  ;;  %v1536_v17 = vrot.slane %v4785_v49, 2  ;;  %3704 = vmatmul.mubr.msk.bf16.gmra.mrb[12].mxu0 %vm258_vm0, %v5080_v43  ;;  %3571 = vmatprep.mubr.msk.bf16.mxu1 %vm258_vm0, %v5080_v43 }
 0x237   : > { %v1537_v3 = vrot.slane %v4806_v59, 2  ;;  %v5868_v13 = vmax.f32 %v4712_v39, 0.0  ;;  %v5869_v30 = vmax.f32 %v4716_v42, 0.0  ;;  %v5114_v2 = vpack.c.bf16 %v1530_v7, %v1528_v28 }
 0x238   : > { %v1539_v53 = vrot.slane %v4809_v15, 2  ;;  %v1533_v39 = vsel %vm1525_vm6, %v1531_v37, %v1532_v24  ;;  %v1034_v42 = vrot.slane %v5033_v14, 1  ;;  %v1035_v6 = vrot.slane %v5090_v38, 1 }
 0x239   : > { %v5104_v45 = vsel %vm776_vm4, %v5868_v13, %v4963_v12  ;;  %v5110_v35 = vsel %vm776_vm4, %v5869_v30, %v4982_v26  ;;  %5870 = vst [vmem:[#allocation22_spill] sm:$0xff] %v5114_v2  ;;  %v1037_v13 = vrot.slane %v5094_v19, 1  ;;  %3725 = vmatprep.mubr.msk.bf16.mxu0 %vm258_vm0, %v5114_v2  ;;  %v1026_v28 = vsel %vm983_vm5, %v1024_v47, %v1025_v8 }
 0x23a   : > { %v1028_v15 = vsel %vm983_vm5, %v1025_v8, %v1027_v41  ;;  %v1535_v7 = vsel %vm1525_vm6, %v1532_v24, %v1534_v46  ;;  %v5133_v30 = vsel %vm776_vm4, %v4945_v4, %v4949_v23  ;;  %v1031_v37 = vsel %vm983_vm5, %v1029_v36, %v1030_v56 }
 0x23b   : > { %v1033_v43 = vsel %vm983_vm5, %v1030_v56, %v1032_v21  ;;  %v1538_v33 = vsel %vm1525_vm6, %v1536_v17, %v1537_v3  ;;  %v5140_v5 = vsel %vm776_vm4, %v4949_v23, %v884_v20  ;;  %v1540_v47 = vsel %vm1525_vm6, %v1537_v3, %v1539_v53 }
 0x23c   : > { %v1541_v8 = vrot.slane %v4791_v61, 2  ;;  %v1542_v24 = vrot.slane %v4820_v0, 2  ;;  %v1544_v46 = vrot.slane %v4823_v1, 2  ;;  %v1036_v4 = vsel %vm983_vm5, %v1034_v42, %v1035_v6 }
 0x23d   : > { %v1038_v41 = vsel %vm983_vm5, %v1035_v6, %v1037_v13  ;;  %v1039_v36 = vrot.slane %v5046_v25, 1  ;;  %v1040_v56 = vrot.slane %v5133_v30, 1  ;;  %v5150_v21 = vpack.c.bf16 %v1028_v15, %v1026_v28 }
 0x23e   : > { %v1042_v23 = vrot.slane %v5140_v5, 1  ;;  %v1546_v20 = vrot.slane %v4799_v27, 2  ;;  %v1547_v17 = vrot.slane %v4837_v11, 2  ;;  %v5155_v3 = vpack.c.bf16 %v1535_v7, %v1533_v39 }
 0x23f   : > { %5871 = vst [vmem:[#allocation23_spill] sm:$0xff] %v5150_v21  ;;  %v5157_v53 = vpack.c.bf16 %v1033_v43, %v1031_v37  ;;  %v5159_v1 = vpack.c.bf16 %v1540_v47, %v1538_v33  ;;  %v1549_v42 = vrot.slane %v4840_v62, 2  ;;  %3572 = vmatmul.mubr.msk.bf16.gmra.mrb[16].mxu1 %vm258_vm0, %v5150_v21  ;;  %v5164_v6 = vpack.c.bf16 %v1038_v41, %v1036_v4  ;;  %v5180_v62 = vld [vmem:[%s5771_s3 + $0xe] sm:$0x3] }
 0x240   : > { %5872 = vst [vmem:[#allocation24_spill] sm:$0xff] %v5155_v3  ;;  %v1543_v13 = vsel %vm1525_vm6, %v1541_v8, %v1542_v24  ;;  %v5170_v28 = vsel %vm776_vm4, %v4953_v50, %v4957_v54  ;;  %v5175_v43 = vsel %vm776_vm4, %v4957_v54, %v5005_v16  ;;  %5875 = vst [vmem:[#allocation27_spill] sm:$0xff] %v5180_v62  ;;  %v5876_v33 = vmax.f32 %v4718_v40, 0.0  ;;  %v5878_v8 = vld [vmem:[#allocation9_spill] sm:$0xff]  ;;  %v5880_v41 = vld [vmem:[#allocation11_spill] sm:$0xff] }
 0x241   : > { %5873 = vst [vmem:[#allocation25_spill] sm:$0xff] %v5157_v53  ;;  %5874 = vst [vmem:[#allocation26_spill] sm:$0xff] %v5159_v1  ;;  %3726 = vmatmul.mubr.msk.bf16.vlgmr.msra.gmra.mrb[0].mxu0 %vm258_vm0, %v5155_v3  ;;  %3575 = vmatprep.mubr.msk.bf16.mxu1 %vm258_vm0, %v5157_v53  ;;  %v1545_v50 = vsel %vm1525_vm6, %v1542_v24, %v1544_v46  ;;  %v1041_v15 = vsel %vm983_vm5, %v1039_v36, %v1040_v56  ;;  %v1044_v7 = vrot.slane %v5061_v34, 1  ;;  %v5879_v46 = vld [vmem:[#allocation10_spill] sm:$0xff] }
 0x242   : > { %v887_v39 = vrot.slane %v5876_v33, 6  ;;  %v5193_v54 = vsel %vm776_vm4, %v4963_v12, %v4978_v18  ;;  %3758 = vmatpush3.bf16.msra.mxu0 %v4617_v22  ;;  %3729 = vmatprep.mubr.msk.bf16.mxu0 %vm258_vm0, %v5159_v1  ;;  %v1043_v40 = vsel %vm983_vm5, %v1040_v56, %v1042_v23  ;;  %v1548_v16 = vsel %vm1525_vm6, %v1546_v20, %v1547_v17  ;;  %v5881_v23 = vld [vmem:[#allocation12_spill] sm:$0xff] }
 0x243   : > { %v5204_v37 = vsel %vm776_vm4, %v4978_v18, %v5011_v10  ;;  %v1550_v47 = vsel %vm1525_vm6, %v1547_v17, %v1549_v42  ;;  %v1045_v12 = vrot.slane %v5170_v28, 1  ;;  %v1047_v22 = vrot.slane %v5175_v43, 1  ;;  %4125 = vmatprep.subr.msk.bf16.mxu0 %vm1151_vm1, %v5180_v62  ;;  %v5882_v17 = vld [vmem:[#allocation13_spill] sm:$0xff] }
 0x244   : > { %5877 = vst [vmem:[#allocation28_spill] sm:$0xff] %v5204_v37  ;;  %v1551_v24 = vrot.slane %v5878_v8, 2  ;;  %v1552_v4 = vrot.slane %v5879_v46, 2  ;;  %v1554_v36 = vrot.slane %v5880_v41, 2  ;;  %v1049_v56 = vrot.slane %v5104_v45, 1 }
 0x245   : > { %v1050_v18 = vrot.slane %v5193_v54, 1  ;;  %v1052_v10 = vrot.slane %v5204_v37, 1  ;;  %v1556_v20 = vrot.slane %v5881_v23, 2  ;;  %v1557_v42 = vrot.slane %v5882_v17, 2  ;;  %v5884_v37 = vld [vmem:[#allocation18_spill] sm:$0xff] }
 0x246   : > { %v5221_v33 = vpack.c.bf16 %v4782_v48, %v4766_v44  ;;  %v5223_v53 = vpack.c.bf16 %v1545_v50, %v1543_v13  ;;  %v5225_v21 = vpack.c.bf16 %v1043_v40, %v1041_v15  ;;  %v1559_v41 = vrot.slane %v5883_v55, 2  ;;  %v5885_v13 = vld [vmem:[#allocation3_spill] sm:$0xff] }
 0x247   : > { %v5230_v1 = vpack.c.bf16 %v4806_v59, %v4785_v49  ;;  %v5232_v3 = vpack.c.bf16 %v1550_v47, %v1548_v16  ;;  %v1046_v2 = vsel %vm983_vm5, %v1044_v7, %v1045_v12  ;;  %v1048_v62 = vsel %vm983_vm5, %v1045_v12, %v1047_v22  ;;  %3576 = vmatmul.mubr.msk.bf16.gmra.mrb[20].mxu1 %vm258_vm0, %v5164_v6 }
 0x248   : > { %v5239_v44 = vsel %vm776_vm4, %v4982_v26, %v5884_v37  ;;  %v1553_v48 = vsel %vm1525_vm6, %v1551_v24, %v1552_v4  ;;  %v1555_v55 = vsel %vm1525_vm6, %v1552_v4, %v1554_v36  ;;  %v5247_v59 = vsel %vm776_vm4, %v5884_v37, %v887_v39  ;;  %3579 = vmatprep.mubr.msk.bf16.mxu1 %vm258_vm0, %v5225_v21 }
 0x249   : > { %v5251_v49 = vpack.c.bf16 %v4820_v0, %v4791_v61  ;;  %v5886_v50 = vmax.f32 %v5885_v13, 0.0  ;;  %3730 = vmatmul.mubr.msk.bf16.gmra.mrb[4].mxu0 %vm258_vm0, %v5223_v53  ;;  %v1051_v26 = vsel %vm983_vm5, %v1049_v56, %v1050_v18  ;;  %v1053_v40 = vsel %vm983_vm5, %v1050_v18, %v1052_v10  ;;  %v5889_v18 = vld [vmem:[#allocation17_spill] sm:$0xff] }
 0x24a   : > { %v1558_v39 = vsel %vm1525_vm6, %v1556_v20, %v1557_v42  ;;  %3733 = vmatprep.mubr.msk.bf16.mxu0 %vm258_vm0, %v5232_v3  ;;  %v1560_v61 = vsel %vm1525_vm6, %v1557_v42, %v1559_v41  ;;  %v1054_v0 = vrot.slane %v5110_v35, 1  ;;  %v1055_v16 = vrot.slane %v5239_v44, 1 }
 0x24b   : > { %v823_v15 = vrot.slane %v5886_v50, 7  ;;  %v5269_v7 = vpack.c.bf16 %v4837_v11, %v4799_v27  ;;  %v5887_v37 = vmov %v5886_v50  ;;  %v1057_v12 = vrot.slane %v5247_v59, 1 }
 0x24c   : > { %v888_v47 = vrot.slane %v5887_v37, 6  ;;  %v5276_v22 = vpack.c.bf16 %v5879_v46, %v5878_v8  ;;  %v5278_v24 = vpack.c.bf16 %v1048_v62, %v1046_v2  ;;  %v5280_v4 = vpack.c.bf16 %v1555_v55, %v1553_v48  ;;  %v5890_v62 = vld [vmem:[#allocation4_spill] sm:$0xff]  ;;  %v5891_v48 = vld [vmem:[#allocation5_spill] sm:$0xff] }
 0x24d   : > { %v5282_v36 = vpack.c.bf16 %v1053_v40, %v1051_v26  ;;  %v5284_v56 = vpack.c.bf16 %v1560_v61, %v1558_v39  ;;  %v1561_v27 = vrot.slane %v4968_v9, 2  ;;  %v1562_v11 = vrot.slane %v4971_v31, 2 }
 0x24e   : > { %v1564_v10 = vrot.slane %v5889_v18, 2  ;;  %v1056_v20 = vsel %vm983_vm5, %v1054_v0, %v1055_v16  ;;  %v1566_v42 = vrot.slane %v5017_v58, 2  ;;  %v5293_v2 = vpack.c.bf16 %v5882_v17, %v5881_v23 }
 0x24f   : > { %5888 = vst [vmem:[#allocation9_spill] sm:$0xff] %v5282_v36  ;;  %v824_v8 = vsel %vm776_vm4, %v5890_v62, %v823_v15  ;;  %v1058_v46 = vsel %vm983_vm5, %v1055_v16, %v1057_v12  ;;  %v936_v41 = vsel %vm776_vm4, %v823_v15, %v888_v47  ;;  %v2302_v55 = vrot.slane %v5891_v48, 2  ;;  %3580 = vmatmul.mubr.msk.bf16.gmra.mrb[24].mxu1 %vm258_vm0, %v5278_v24 }
 0x250   : > { %v2303_v13 = vrot.slane %v824_v8, 2  ;;  %v1567_v50 = vrot.slane %v5055_v57, 2  ;;  %v2305_v26 = vrot.slane %v936_v41, 2  ;;  %v5305_v23 = vpack.c.bf16 %v4971_v31, %v4968_v9  ;;  %3583 = vmatprep.mubr.msk.bf16.mxu1 %vm258_vm0, %v5282_v36 }
 0x251   : > { %v5309_v17 = vpack.c.bf16 %v5055_v57, %v5017_v58  ;;  %3734 = vmatmul.mubr.msk.bf16.gmra.mrb[8].mxu0 %vm258_vm0, %v5280_v4  ;;  %v1569_v15 = vrot.slane %v5067_v60, 2  ;;  %v5319_v39 = vpack.c.bf16 %v5074_v51, %v5023_v29  ;;  %v5323_v9 = vpack.c.bf16 %v5090_v38, %v5033_v14 }
 0x252   : > { %v2304_v40 = vsel %vm1525_vm6, %v2302_v55, %v2303_v13  ;;  %3737 = vmatprep.mubr.msk.bf16.mxu0 %vm258_vm0, %v5284_v56  ;;  %v2306_v58 = vsel %vm1525_vm6, %v2303_v13, %v2305_v26  ;;  %v5330_v31 = vpack.c.bf16 %v5133_v30, %v5046_v25  ;;  %v5334_v57 = vpack.c.bf16 %v5170_v28, %v5061_v34 }
 0x253   : > { %v5338_v60 = vpack.c.bf16 %v5193_v54, %v5104_v45  ;;  %v1563_v61 = vsel %vm1525_vm6, %v1561_v27, %v1562_v11  ;;  %v5341_v0 = vpack.c.bf16 %v2306_v58, %v2304_v40  ;;  %v5345_v16 = vpack.c.bf16 %v5239_v44, %v5110_v35 }
 0x254   : > { %v5348_v37 = vpack.c.bf16 %v824_v8, %v5891_v48  ;;  %v1565_v47 = vsel %vm1525_vm6, %v1562_v11, %v1564_v10  ;;  %v2093_v12 = vrot.slane %v5891_v48, 1  ;;  %v2094_v18 = vrot.slane %v824_v8, 1  ;;  %v5892_v48 = vld [vmem:[#allocation8_spill] sm:$0xff] }
 0x255   : > { %v2096_v62 = vrot.slane %v936_v41, 1  ;;  %v1568_v55 = vsel %vm1525_vm6, %v1566_v42, %v1567_v50  ;;  %v1570_v13 = vsel %vm1525_vm6, %v1567_v50, %v1569_v15  ;;  %v5354_v27 = vpack.c.bf16 %v1058_v46, %v1056_v20 }
 0x256   : > { %v2095_v26 = vsel %vm983_vm5, %v2093_v12, %v2094_v18  ;;  %v5358_v58 = vpack.c.bf16 %v1565_v47, %v1563_v61  ;;  %v5362_v36 = vpack.c.bf16 %v4773_v52, %v4776_v63  ;;  %v5368_v10 = vpack.c.bf16 %v1570_v13, %v1568_v55  ;;  %v3293_v47 = vld [vmem:[%s5771_s3 + $0x6] sm:$0x3] }
 0x257   : > { %v2097_v40 = vsel %vm983_vm5, %v2094_v18, %v2096_v62  ;;  %3584 = vmatmul.mubr.msk.bf16.gmra.mrb[28].mxu1 %vm258_vm0, %v5354_v27  ;;  %v1571_v20 = vrot.slane %v5023_v29, 2  ;;  %v1572_v42 = vrot.slane %v5074_v51, 2  ;;  %v1574_v8 = vrot.slane %v5078_v32, 2 }
 0x258   : > { %v5364_v11 = vpack.c.bf16 %v2097_v40, %v2095_v26  ;;  %3589 = vmatprep.mubr.msk.bf16.mxu1 %vm258_vm0, %v5362_v36  ;;  %v1576_v52 = vrot.slane %v5033_v14, 2  ;;  %v1577_v63 = vrot.slane %v5090_v38, 2  ;;  %v1579_v46 = vrot.slane %v5094_v19, 2  ;;  %v5893_v26 = vld [vmem:[#allocation28_spill] sm:$0xff] }
 0x259   : > { %3738 = vmatmul.mubr.msk.bf16.gmra.mrb[12].mxu0 %vm258_vm0, %v5358_v58  ;;  %v1573_v29 = vsel %vm1525_vm6, %v1571_v20, %v1572_v42  ;;  %v1575_v51 = vsel %vm1525_vm6, %v1572_v42, %v1574_v8  ;;  %v1694_v50 = vsel %vm1151_vm1, %v5892_v48, 0  ;;  %v1581_v38 = vrot.slane %v5046_v25, 2  ;;  %v4139_v48 = vld [vmem:[%s5771_s3 + $0x8] sm:$0x3] }
 0x25a   : > { %3741 = vmatprep.mubr.msk.bf16.mxu0 %vm258_vm0, %v5368_v10  ;;  %v1578_v32 = vsel %vm1525_vm6, %v1576_v52, %v1577_v63  ;;  %v1580_v41 = vsel %vm1525_vm6, %v1577_v63, %v1579_v46  ;;  %v5388_v15 = vpack.c.bf16 %v1575_v51, %v1573_v29  ;;  %v1582_v19 = vrot.slane %v5133_v30, 2  ;;  %v3378_v29 = vld [vmem:[%s5771_s3 + $0x10] sm:$0x3]  ;;  %v5895_v51 = vld [vmem:[#allocation22_spill] sm:$0xff] }
 0x25b   : > { %v5392_v14 = vpack.c.bf16 %v1580_v41, %v1578_v32  ;;  %v1584_v61 = vrot.slane %v5140_v5, 2  ;;  %v1586_v12 = vrot.slane %v5061_v34, 2  ;;  %v1587_v18 = vrot.slane %v5170_v28, 2  ;;  %v5896_v41 = vld [vmem:[#allocation24_spill] sm:$0xff] }
 0x25c   : > { %v1589_v62 = vrot.slane %v5175_v43, 2  ;;  %v1583_v5 = vsel %vm1525_vm6, %v1581_v38, %v1582_v19  ;;  %v1591_v43 = vrot.slane %v5104_v45, 2  ;;  %v1592_v13 = vrot.slane %v5193_v54, 2  ;;  %v5898_v38 = vld [vmem:[#allocation6_spill] sm:$0xff] }
 0x25d   : > { %v1585_v25 = vsel %vm1525_vm6, %v1582_v19, %v1584_v61  ;;  %v1588_v30 = vsel %vm1525_vm6, %v1586_v12, %v1587_v18  ;;  %v1594_v40 = vrot.slane %v5893_v26, 2  ;;  %v1596_v20 = vrot.slane %v5110_v35, 2  ;;  %v5899_v61 = vld [vmem:[#allocation7_spill] sm:$0xff]  ;;  %v5901_v12 = vld [vmem:[#allocation16_spill] sm:$0xff] }
 0x25e   : > { %v1590_v34 = vsel %vm1525_vm6, %v1587_v18, %v1589_v62  ;;  %v5414_v55 = vpack.c.bf16 %v1585_v25, %v1583_v5  ;;  %v1597_v42 = vrot.slane %v5239_v44, 2  ;;  %v1599_v8 = vrot.slane %v5247_v59, 2  ;;  %v5894_v44 = vld [vmem:[#allocation27_spill] sm:$0xff]  ;;  %v5903_v62 = vld [vmem:[#allocation20_spill] sm:$0xff]  ;;  %v5904_v5 = vld [vmem:[#allocation21_spill] sm:$0xff] }
 0x25f   : > { %3590 = vmatmul.mubr.msk.bf16.vlgmr.msra.gmra.mrb[0].mxu1 %vm258_vm0, %v5362_v36  ;;  %v5418_v28 = vpack.c.bf16 %v1590_v34, %v1588_v30  ;;  %v1593_v45 = vsel %vm1525_vm6, %v1591_v43, %v1592_v13  ;;  %v1595_v54 = vsel %vm1525_vm6, %v1592_v13, %v1594_v40  ;;  %v2712_v59 = vsel %vm1151_vm1, %v5894_v44, 0  ;;  %v5902_v18 = vld [vmem:[#allocation19_spill] sm:$0xff]  ;;  %v5906_v30 = vld [vmem:[#allocation25_spill] sm:$0xff]  ;;  %v5907_v34 = vld [vmem:[#allocation2_spill] sm:$0xff] }
 0x260   : > { %3622 = vmatpush3.bf16.msra.mxu1 %v1694_v50  ;;  %3593 = vmatprep.mubr.msk.bf16.mxu1 %vm258_vm0, %v5221_v33  ;;  %v1598_v52 = vsel %vm1525_vm6, %v1596_v20, %v1597_v42  ;;  %v1600_v63 = vsel %vm1525_vm6, %v1597_v42, %v1599_v8  ;;  %v5436_v46 = vpack.c.bf16 %v1595_v54, %v1593_v45  ;;  %v1896_v32 = vsel %vm1151_vm1, %v3293_v47, 0  ;;  %v5897_v50 = vld [vmem:[#allocation26_spill] sm:$0xff]  ;;  %v5905_v25 = vld [vmem:[#allocation23_spill] sm:$0xff] }
 0x261   : > { %3742 = vmatmul.mubr.msk.bf16.gmra.mrb[16].mxu0 %vm258_vm0, %v5388_v15  ;;  %4120 = vmatprep.subr.msk.bf16.mxu1 %vm1151_vm1, %v3293_v47  ;;  %v5440_v35 = vpack.c.bf16 %v1600_v63, %v1598_v52  ;;  %v2910_v19 = vsel %vm1151_vm1, %v3378_v29, 0  ;;  %v5900_v47 = vld [vmem:[#allocation15_spill] sm:$0xff] }
 0x262   : > { %3745 = vmatprep.mubr.msk.bf16.mxu0 %vm258_vm0, %v5392_v14 }
 0x267   : > { %3594 = vmatmul.mubr.msk.bf16.gmra.mrb[4].mxu1 %vm258_vm0, %v5230_v1 }
 0x268   : > { %3597 = vmatprep.mubr.msk.bf16.mxu1 %vm258_vm0, %v5251_v49 }
 0x269   : > { %3746 = vmatmul.mubr.msk.bf16.gmra.mrb[20].mxu0 %vm258_vm0, %v5414_v55 }
 0x26a   : > { %3749 = vmatprep.mubr.msk.bf16.mxu0 %vm258_vm0, %v5418_v28 }
 0x26f   : > { %3598 = vmatmul.mubr.msk.bf16.gmra.mrb[8].mxu1 %vm258_vm0, %v5269_v7 }
 0x270   : > { %3601 = vmatprep.mubr.msk.bf16.mxu1 %vm258_vm0, %v5276_v22 }
 0x271   : > { %3750 = vmatmul.mubr.msk.bf16.gmra.mrb[24].mxu0 %vm258_vm0, %v5436_v46 }
 0x272   : > { %3753 = vmatprep.mubr.msk.bf16.mxu0 %vm258_vm0, %v5440_v35 }
 0x277   : > { %3602 = vmatmul.mubr.msk.bf16.gmra.mrb[12].mxu1 %vm258_vm0, %v5293_v2 }
 0x278   : > { %3605 = vmatprep.mubr.msk.bf16.mxu1 %vm258_vm0, %v5305_v23 }
 0x279   : > { %3754 = vmatmul.mubr.msk.bf16.gmra.mrb[28].mxu0 %vm258_vm0, %v5341_v0 }
 0x27a   : > { %3759 = vmatprep.mubr.msk.bf16.mxu0 %vm258_vm0, %v5221_v33 }
 0x27f   : > { %3606 = vmatmul.mubr.msk.bf16.gmra.mrb[16].mxu1 %vm258_vm0, %v5309_v17 }
 0x280   : > { %3609 = vmatprep.mubr.msk.bf16.mxu1 %vm258_vm0, %v5319_v39 }
 0x281   : > { %3760 = vmatmul.mubr.msk.bf16.vlgmr.msra.gmra.mrb[0].mxu0 %vm258_vm0, %v5230_v1 }
 0x282   : > { %3792 = vmatpush3.bf16.msra.mxu0 %v2712_v59  ;;  %3763 = vmatprep.mubr.msk.bf16.mxu0 %vm258_vm0, %v5251_v49 }
 0x283   : > { %4126 = vmatprep.subr.msk.bf16.mxu0 %vm1151_vm1, %v3378_v29 }
 0x287   : > { %3610 = vmatmul.mubr.msk.bf16.gmra.mrb[20].mxu1 %vm258_vm0, %v5323_v9 }
 0x288   : > { %3613 = vmatprep.mubr.msk.bf16.mxu1 %vm258_vm0, %v5330_v31 }
 0x289   : > { %3764 = vmatmul.mubr.msk.bf16.gmra.mrb[4].mxu0 %vm258_vm0, %v5269_v7 }
 0x28a   : > { %3767 = vmatprep.mubr.msk.bf16.mxu0 %vm258_vm0, %v5276_v22 }
 0x28f   : > { %3614 = vmatmul.mubr.msk.bf16.gmra.mrb[24].mxu1 %vm258_vm0, %v5334_v57 }
 0x290   : > { %3617 = vmatprep.mubr.msk.bf16.mxu1 %vm258_vm0, %v5338_v60 }
 0x291   : > { %3768 = vmatmul.mubr.msk.bf16.gmra.mrb[8].mxu0 %vm258_vm0, %v5293_v2 }
 0x292   : > { %3771 = vmatprep.mubr.msk.bf16.mxu0 %vm258_vm0, %v5305_v23 }
 0x297   : > { %3618 = vmatmul.mubr.msk.bf16.gmra.mrb[28].mxu1 %vm258_vm0, %v5345_v16 }
 0x298   : > { %3623 = vmatprep.mubr.msk.bf16.mxu1 %vm258_vm0, %v5895_v51 }
 0x299   : > { %3772 = vmatmul.mubr.msk.bf16.gmra.mrb[12].mxu0 %vm258_vm0, %v5309_v17 }
 0x29a   : > { %3775 = vmatprep.mubr.msk.bf16.mxu0 %vm258_vm0, %v5319_v39 }
 0x29f   : > { %3624 = vmatmul.mubr.msk.bf16.vlgmr.msra.gmra.mrb[0].mxu1 %vm258_vm0, %v5895_v51 }
 0x2a0   : > { %3656 = vmatpush3.bf16.msra.mxu1 %v1896_v32  ;;  %3627 = vmatprep.mubr.msk.bf16.mxu1 %vm258_vm0, %v5896_v41 }
 0x2a1   : > { %3776 = vmatmul.mubr.msk.bf16.gmra.mrb[16].mxu0 %vm258_vm0, %v5323_v9  ;;  %4122 = vmatprep.subr.msk.bf16.mxu1 %vm1151_vm1, %v4139_v48 }
 0x2a2   : > { %3779 = vmatprep.mubr.msk.bf16.mxu0 %vm258_vm0, %v5330_v31 }
 0x2a7   : > { %3628 = vmatmul.mubr.msk.bf16.gmra.mrb[4].mxu1 %vm258_vm0, %v5897_v50 }
 0x2a8   : > { %3631 = vmatprep.mubr.msk.bf16.mxu1 %vm258_vm0, %v5223_v53 }
 0x2a9   : > { %3780 = vmatmul.mubr.msk.bf16.gmra.mrb[20].mxu0 %vm258_vm0, %v5334_v57 }
 0x2aa   : > { %3783 = vmatprep.mubr.msk.bf16.mxu0 %vm258_vm0, %v5338_v60 }
 0x2af   : > { %3632 = vmatmul.mubr.msk.bf16.gmra.mrb[8].mxu1 %vm258_vm0, %v5232_v3 }
 0x2b0   : > { %3635 = vmatprep.mubr.msk.bf16.mxu1 %vm258_vm0, %v5280_v4 }
 0x2b1   : > { %3784 = vmatmul.mubr.msk.bf16.gmra.mrb[24].mxu0 %vm258_vm0, %v5345_v16 }
 0x2b2   : > { %3787 = vmatprep.mubr.msk.bf16.mxu0 %vm258_vm0, %v5348_v37 }
 0x2b7   : > { %3636 = vmatmul.mubr.msk.bf16.gmra.mrb[12].mxu1 %vm258_vm0, %v5284_v56 }
 0x2b8   : > { %3639 = vmatprep.mubr.msk.bf16.mxu1 %vm258_vm0, %v5358_v58 }
 0x2b9   : > { %3788 = vmatmul.mubr.msk.bf16.gmra.mrb[28].mxu0 %vm258_vm0, %v5348_v37 }
 0x2ba   : > { %3793 = vmatprep.mubr.msk.bf16.mxu0 %vm258_vm0, %v5898_v38 }
 0x2bf   : > { %3640 = vmatmul.mubr.msk.bf16.gmra.mrb[16].mxu1 %vm258_vm0, %v5368_v10 }
 0x2c0   : > { %3643 = vmatprep.mubr.msk.bf16.mxu1 %vm258_vm0, %v5388_v15 }
 0x2c1   : > { %3794 = vmatmul.mubr.msk.bf16.vlgmr.msra.gmra.mrb[0].mxu0 %vm258_vm0, %v5899_v61 }
 0x2c2   : > { %3826 = vmatpush3.bf16.msra.mxu0 %v2910_v19  ;;  %3797 = vmatprep.mubr.msk.bf16.mxu0 %vm258_vm0, %v5900_v47 }
 0x2c7   : > { %3644 = vmatmul.mubr.msk.bf16.gmra.mrb[20].mxu1 %vm258_vm0, %v5392_v14 }
 0x2c8   : > { %3647 = vmatprep.mubr.msk.bf16.mxu1 %vm258_vm0, %v5414_v55 }
 0x2c9   : > { %3798 = vmatmul.mubr.msk.bf16.gmra.mrb[4].mxu0 %vm258_vm0, %v5901_v12 }
 0x2ca   : > { %3801 = vmatprep.mubr.msk.bf16.mxu0 %vm258_vm0, %v5902_v18 }
 0x2cf   : > { %3648 = vmatmul.mubr.msk.bf16.gmra.mrb[24].mxu1 %vm258_vm0, %v5418_v28 }
 0x2d0   : > { %3651 = vmatprep.mubr.msk.bf16.mxu1 %vm258_vm0, %v5436_v46 }
 0x2d1   : > { %3802 = vmatmul.mubr.msk.bf16.gmra.mrb[8].mxu0 %vm258_vm0, %v5903_v62 }
 0x2d2   : > { %3805 = vmatprep.mubr.msk.bf16.mxu0 %vm258_vm0, %v5904_v5 }
 0x2d7   : > { %3652 = vmatmul.mubr.msk.bf16.gmra.mrb[28].mxu1 %vm258_vm0, %v5440_v35 }
 0x2d8   : > { %3657 = vmatprep.mubr.msk.bf16.mxu1 %vm258_vm0, %v5362_v36 }
 0x2d9   : > { %3806 = vmatmul.mubr.msk.bf16.gmra.mrb[12].mxu0 %vm258_vm0, %v5905_v25 }
 0x2da   : > { %3809 = vmatprep.mubr.msk.bf16.mxu0 %vm258_vm0, %v5906_v30 }
 0x2df   : > { %3658 = vmatmul.mubr.msk.bf16.vlgmr.msra.gmra.mrb[0].mxu1 %vm258_vm0, %v5221_v33  ;;  %v5908_v33 = vld [vmem:[#allocation9_spill] sm:$0xff] }
 0x2e0   : > { %3860 = vmatpush3.bf16.msra.mxu1 %v5907_v34  ;;  %3661 = vmatprep.mubr.msk.bf16.mxu1 %vm258_vm0, %v5230_v1 }
 0x2e1   : > { %3810 = vmatmul.mubr.msk.bf16.gmra.mrb[16].mxu0 %vm258_vm0, %v5164_v6 }
 0x2e2   : > { %3813 = vmatprep.mubr.msk.bf16.mxu0 %vm258_vm0, %v5225_v21 }
 0x2e7   : > { %3662 = vmatmul.mubr.msk.bf16.gmra.mrb[4].mxu1 %vm258_vm0, %v5251_v49 }
 0x2e8   : > { %3665 = vmatprep.mubr.msk.bf16.mxu1 %vm258_vm0, %v5269_v7 }
 0x2e9   : > { %3814 = vmatmul.mubr.msk.bf16.gmra.mrb[20].mxu0 %vm258_vm0, %v5278_v24 }
 0x2ea   : > { %3817 = vmatprep.mubr.msk.bf16.mxu0 %vm258_vm0, %v5908_v33 }
 0x2ef   : > { %3666 = vmatmul.mubr.msk.bf16.gmra.mrb[8].mxu1 %vm258_vm0, %v5276_v22 }
 0x2f0   : > { %3669 = vmatprep.mubr.msk.bf16.mxu1 %vm258_vm0, %v5293_v2 }
 0x2f1   : > { %3818 = vmatmul.mubr.msk.bf16.gmra.mrb[24].mxu0 %vm258_vm0, %v5354_v27 }
 0x2f2   : > { %3821 = vmatprep.mubr.msk.bf16.mxu0 %vm258_vm0, %v5364_v11 }
 0x2f7   : > { %3670 = vmatmul.mubr.msk.bf16.gmra.mrb[12].mxu1 %vm258_vm0, %v5305_v23 }
 0x2f8   : > { %3673 = vmatprep.mubr.msk.bf16.mxu1 %vm258_vm0, %v5309_v17 }
 0x2f9   : > { %3822 = vmatmul.mubr.msk.bf16.gmra.mrb[28].mxu0 %vm258_vm0, %v5364_v11 }
 0x2fa   : > { %3827 = vmatprep.mubr.msk.bf16.mxu0 %vm258_vm0, %v5896_v41 }
 0x2ff   : > { %3674 = vmatmul.mubr.msk.bf16.gmra.mrb[16].mxu1 %vm258_vm0, %v5319_v39 }
 0x300   : > { %3677 = vmatprep.mubr.msk.bf16.mxu1 %vm258_vm0, %v5323_v9 }
 0x301   : > { %3828 = vmatmul.mubr.msk.bf16.vlgmr.msra.gmra.mrb[0].mxu0 %vm258_vm0, %v5897_v50 }
 0x302   : > { %3831 = vmatprep.mubr.msk.bf16.mxu0 %vm258_vm0, %v5223_v53 }
 0x307   : > { %3678 = vmatmul.mubr.msk.bf16.gmra.mrb[20].mxu1 %vm258_vm0, %v5330_v31  ;;  %v5660_v31 = vld [vmem:[%s5772_s4] ss:$0 sm:$0xff] }
 0x308   : > { %3681 = vmatprep.mubr.msk.bf16.mxu1 %vm258_vm0, %v5334_v57 }
 0x309   : > { %3832 = vmatmul.mubr.msk.bf16.gmra.mrb[4].mxu0 %vm258_vm0, %v5232_v3 }
 0x30a   : > { %3835 = vmatprep.mubr.msk.bf16.mxu0 %vm258_vm0, %v5280_v4 }
 0x30f   : > { %3682 = vmatmul.mubr.msk.bf16.gmra.mrb[24].mxu1 %vm258_vm0, %v5338_v60 }
 0x310   : > { %3685 = vmatprep.mubr.msk.bf16.mxu1 %vm258_vm0, %v5345_v16 }
 0x311   : > { %3836 = vmatmul.mubr.msk.bf16.gmra.mrb[8].mxu0 %vm258_vm0, %v5284_v56 }
 0x312   : > { %3839 = vmatprep.mubr.msk.bf16.mxu0 %vm258_vm0, %v5358_v58 }
 0x317   : > { %3686 = vmatmul.mubr.msk.bf16.gmra.mrb[28].mxu1 %vm258_vm0, %v5348_v37 }
 0x318   : > { %3707 = vmatprep.mubr.msk.bf16.mxu1 %vm258_vm0, %v5905_v25 }
 0x319   : > { %3840 = vmatmul.mubr.msk.bf16.gmra.mrb[12].mxu0 %vm258_vm0, %v5368_v10 }
 0x31a   : > { %3843 = vmatprep.mubr.msk.bf16.mxu0 %vm258_vm0, %v5388_v15 }
 0x31f   : > { %3708 = vmatmul.mubr.msk.bf16.vlgmr.msra.gmra.mrb[16].mxu1 %vm258_vm0, %v5906_v30 }
 0x320   : > { %3711 = vmatprep.mubr.msk.bf16.mxu1 %vm258_vm0, %v5164_v6 }
 0x321   : > { %3844 = vmatmul.mubr.msk.bf16.gmra.mrb[16].mxu0 %vm258_vm0, %v5392_v14 }
 0x322   : > { %3847 = vmatprep.mubr.msk.bf16.mxu0 %vm258_vm0, %v5414_v55 }
 0x327   : > { %3712 = vmatmul.mubr.msk.bf16.gmra.mrb[20].mxu1 %vm258_vm0, %v5225_v21 }
 0x328   : > { %3715 = vmatprep.mubr.msk.bf16.mxu1 %vm258_vm0, %v5278_v24 }
 0x329   : > { %3848 = vmatmul.mubr.msk.bf16.gmra.mrb[20].mxu0 %vm258_vm0, %v5418_v28 }
 0x32a   : > { %3851 = vmatprep.mubr.msk.bf16.mxu0 %vm258_vm0, %v5436_v46 }
 0x32f   : > { %3716 = vmatmul.mubr.msk.bf16.gmra.mrb[24].mxu1 %vm258_vm0, %v5908_v33 }
 0x330   : > { %3719 = vmatprep.mubr.msk.bf16.mxu1 %vm258_vm0, %v5354_v27 }
 0x331   : > { %3852 = vmatmul.mubr.msk.bf16.gmra.mrb[24].mxu0 %vm258_vm0, %v5440_v35 }
 0x332   : > { %3855 = vmatprep.mubr.msk.bf16.mxu0 %vm258_vm0, %v5341_v0 }
 0x337   : > { %3720 = vmatmul.mubr.msk.bf16.gmra.mrb[28].mxu1 %vm258_vm0, %v5364_v11 }
 0x339   : > { %3856 = vmatmul.mubr.msk.bf16.gmra.mrb[28].mxu0 %vm258_vm0, %v5341_v0 }
 0x3b2   : > { %v3659_v21 = vpop.f32.mrb[0].mxu1 }
 0x3b3   : > { %v1932_v3 = vpop.f32.mrb[1].mxu1 }
 0x3b4   : > { %v3660_v53 = vpop.f32.mrb[2].mxu1 }
 0x3b5   : > { %v1935_v1 = vpop.f32.mrb[3].mxu1 }
 0x3ba   : > { %v3663_v6 = vpop.f32.mrb[4].mxu1 }
 0x3bb   : > { %v1948_v49 = vpop.f32.mrb[5].mxu1 }
 0x3bc   : > { %v3664_v7 = vpop.f32.mrb[6].mxu1 }
 0x3bd   : > { %v1951_v22 = vpop.f32.mrb[7].mxu1 }
 0x3c2   : > { %v3667_v24 = vpop.f32.mrb[8].mxu1 }
 0x3c3   : > { %v1964_v4 = vpop.f32.mrb[9].mxu1 }
 0x3c4   : > { %v3668_v36 = vpop.f32.mrb[10].mxu1 }
 0x3c5   : > { %v1967_v56 = vpop.f32.mrb[11].mxu1 }
 0x3ca   : > { %v3671_v2 = vpop.f32.mrb[12].mxu1 }
 0x3cb   : > { %v1980_v23 = vpop.f32.mrb[13].mxu1 }
 0x3cc   : > { %v3672_v17 = vpop.f32.mrb[14].mxu1 }
 0x3cd   : > { %v1983_v39 = vpop.f32.mrb[15].mxu1 }
 0x3d4   : > { %v3829_v9 = vpop.f32.mrb[0].mxu0 }
 0x3d5   : > { %v3861_v57 = vadd.f32 %v3829_v9, %v3659_v21  ;;  %v2946_v60 = vpop.f32.mrb[1].mxu0 }
 0x3d6   : > { %v3862_v0 = vadd.f32 %v2946_v60, %v1932_v3  ;;  %v3830_v16 = vpop.f32.mrb[2].mxu0 }
 0x3d7   : > { %v3114_v37 = vadd.f32 %v3861_v57, %v5660_v31  ;;  %v3863_v27 = vadd.f32 %v3830_v16, %v3660_v53  ;;  %v2949_v58 = vpop.f32.mrb[3].mxu0 }
 0x3d8   : > { %v3112_v11 = vadd.f32 %v3862_v0, %v5660_v31  ;;  %v3864_v10 = vadd.f32 %v2949_v58, %v1935_v1 }
 0x3d9   : > { %3147 = vst.msk [vmem:[%s5667_s30 + $0x10] sm:$0xff] %vm3144_vm7, %v3114_v37  ;;  %v3115_v15 = vadd.f32 %v3863_v27, %v5660_v31 }
 0x3da   : > { %3145 = vst.msk [vmem:[%s5667_s30] sm:$0xff] %vm3144_vm7, %v3112_v11  ;;  %v3113_v14 = vadd.f32 %v3864_v10, %v5660_v31 }
 0x3db   : > { %3148 = vst.msk [vmem:[%s5667_s30 + $0x18] sm:$0xff] %vm3144_vm7, %v3115_v15 }
 0x3dc   : > { %3146 = vst.msk [vmem:[%s5667_s30 + $0x8] sm:$0xff] %vm3144_vm7, %v3113_v14  ;;  %v3833_v55 = vpop.f32.mrb[4].mxu0 }
 0x3dd   : > { %v3865_v28 = vadd.f32 %v3833_v55, %v3663_v6  ;;  %v2962_v43 = vpop.f32.mrb[5].mxu0 }
 0x3de   : > { %v3866_v13 = vadd.f32 %v2962_v43, %v1948_v49  ;;  %v3834_v26 = vpop.f32.mrb[6].mxu0 }
 0x3df   : > { %v3118_v40 = vadd.f32 %v3865_v28, %v5660_v31  ;;  %v3867_v20 = vadd.f32 %v3834_v26, %v3664_v7  ;;  %v2965_v42 = vpop.f32.mrb[7].mxu0 }
 0x3e0   : > { %v3116_v8 = vadd.f32 %v3866_v13, %v5660_v31  ;;  %v3868_v45 = vadd.f32 %v2965_v42, %v1951_v22 }
 0x3e1   : > { %3151 = vst.msk [vmem:[%s5667_s30 + $0x30] sm:$0xff] %vm3144_vm7, %v3118_v40  ;;  %v3119_v54 = vadd.f32 %v3867_v20, %v5660_v31 }
 0x3e2   : > { %3149 = vst.msk [vmem:[%s5667_s30 + $0x20] sm:$0xff] %vm3144_vm7, %v3116_v8  ;;  %v3117_v52 = vadd.f32 %v3868_v45, %v5660_v31 }
 0x3e3   : > { %3152 = vst.msk [vmem:[%s5667_s30 + $0x38] sm:$0xff] %vm3144_vm7, %v3119_v54 }
 0x3e4   : > { %3150 = vst.msk [vmem:[%s5667_s30 + $0x28] sm:$0xff] %vm3144_vm7, %v3117_v52  ;;  %v3837_v63 = vpop.f32.mrb[8].mxu0 }
 0x3e5   : > { %v3869_v46 = vadd.f32 %v3837_v63, %v3667_v24  ;;  %v2978_v35 = vpop.f32.mrb[9].mxu0 }
 0x3e6   : > { %v3870_v44 = vadd.f32 %v2978_v35, %v1964_v4  ;;  %v3838_v59 = vpop.f32.mrb[10].mxu0 }
 0x3e7   : > { %v3122_v29 = vadd.f32 %v3869_v46, %v5660_v31  ;;  %v3871_v51 = vadd.f32 %v3838_v59, %v3668_v36  ;;  %v2981_v32 = vpop.f32.mrb[11].mxu0 }
 0x3e8   : > { %v3120_v41 = vadd.f32 %v3870_v44, %v5660_v31  ;;  %v3872_v48 = vadd.f32 %v2981_v32, %v1967_v56 }
 0x3e9   : > { %3155 = vst.msk [vmem:[%s5667_s30 + $0x50] sm:$0xff] %vm3144_vm7, %v3122_v29  ;;  %v3123_v50 = vadd.f32 %v3871_v51, %v5660_v31 }
 0x3ea   : > { %3153 = vst.msk [vmem:[%s5667_s30 + $0x40] sm:$0xff] %vm3144_vm7, %v3120_v41  ;;  %v3121_v38 = vadd.f32 %v3872_v48, %v5660_v31 }
 0x3eb   : > { %3156 = vst.msk [vmem:[%s5667_s30 + $0x58] sm:$0xff] %vm3144_vm7, %v3123_v50 }
 0x3ec   : > { %3154 = vst.msk [vmem:[%s5667_s30 + $0x48] sm:$0xff] %vm3144_vm7, %v3121_v38  ;;  %v3841_v19 = vpop.f32.mrb[12].mxu0 }
 0x3ed   : > { %v3873_v61 = vadd.f32 %v3841_v19, %v3671_v2  ;;  %v2994_v47 = vpop.f32.mrb[13].mxu0 }
 0x3ee   : > { %v3874_v12 = vadd.f32 %v2994_v47, %v1980_v23  ;;  %v3842_v18 = vpop.f32.mrb[14].mxu0 }
 0x3ef   : > { %v3126_v62 = vadd.f32 %v3873_v61, %v5660_v31  ;;  %v3875_v5 = vadd.f32 %v3842_v18, %v3672_v17  ;;  %v2997_v25 = vpop.f32.mrb[15].mxu0 }
 0x3f0   : > { %v3124_v30 = vadd.f32 %v3874_v12, %v5660_v31  ;;  %v3876_v34 = vadd.f32 %v2997_v25, %v1983_v39 }
 0x3f1   : > { %3159 = vst.msk [vmem:[%s5667_s30 + $0x70] sm:$0xff] %vm3144_vm7, %v3126_v62  ;;  %v3127_v33 = vadd.f32 %v3875_v5, %v5660_v31 }
 0x3f2   : > { %3157 = vst.msk [vmem:[%s5667_s30 + $0x60] sm:$0xff] %vm3144_vm7, %v3124_v30  ;;  %v3125_v21 = vadd.f32 %v3876_v34, %v5660_v31  ;;  %v3709_v3 = vpop.f32.mrb[16].mxu1 }
 0x3f3   : > { %3160 = vst.msk [vmem:[%s5667_s30 + $0x78] sm:$0xff] %vm3144_vm7, %v3127_v33  ;;  %v2207_v1 = vpop.f32.mrb[17].mxu1 }
 0x3f4   : > { %3158 = vst.msk [vmem:[%s5667_s30 + $0x68] sm:$0xff] %vm3144_vm7, %v3125_v21  ;;  %v3845_v53 = vpop.f32.mrb[16].mxu0  ;;  %v3710_v7 = vpop.f32.mrb[18].mxu1 }
 0x3f5   : > { %v3877_v6 = vadd.f32 %v3845_v53, %v3709_v3  ;;  %v3010_v49 = vpop.f32.mrb[17].mxu0  ;;  %v2210_v4 = vpop.f32.mrb[19].mxu1 }
 0x3f6   : > { %v3878_v22 = vadd.f32 %v3010_v49, %v2207_v1  ;;  %v3846_v24 = vpop.f32.mrb[18].mxu0 }
 0x3f7   : > { %v3130_v36 = vadd.f32 %v3877_v6, %v5660_v31  ;;  %v3879_v56 = vadd.f32 %v3846_v24, %v3710_v7  ;;  %v3013_v2 = vpop.f32.mrb[19].mxu0 }
 0x3f8   : > { %v3128_v23 = vadd.f32 %v3878_v22, %v5660_v31  ;;  %v3880_v17 = vadd.f32 %v3013_v2, %v2210_v4 }
 0x3f9   : > { %3163 = vst.msk [vmem:[%s5667_s30 + $0x90] sm:$0xff] %vm3144_vm7, %v3130_v36  ;;  %v3131_v39 = vadd.f32 %v3879_v56, %v5660_v31 }
 0x3fa   : > { %3161 = vst.msk [vmem:[%s5667_s30 + $0x80] sm:$0xff] %vm3144_vm7, %v3128_v23  ;;  %v3129_v9 = vadd.f32 %v3880_v17, %v5660_v31  ;;  %v3713_v57 = vpop.f32.mrb[20].mxu1 }
 0x3fb   : > { %3164 = vst.msk [vmem:[%s5667_s30 + $0x98] sm:$0xff] %vm3144_vm7, %v3131_v39  ;;  %v2223_v0 = vpop.f32.mrb[21].mxu1 }
 0x3fc   : > { %3162 = vst.msk [vmem:[%s5667_s30 + $0x88] sm:$0xff] %vm3144_vm7, %v3129_v9  ;;  %v3849_v60 = vpop.f32.mrb[20].mxu0  ;;  %v3714_v27 = vpop.f32.mrb[22].mxu1 }
 0x3fd   : > { %v3881_v16 = vadd.f32 %v3849_v60, %v3713_v57  ;;  %v3026_v37 = vpop.f32.mrb[21].mxu0  ;;  %v2226_v10 = vpop.f32.mrb[23].mxu1 }
 0x3fe   : > { %v3882_v58 = vadd.f32 %v3026_v37, %v2223_v0  ;;  %v3850_v11 = vpop.f32.mrb[22].mxu0 }
 0x3ff   : > { %v3134_v15 = vadd.f32 %v3881_v16, %v5660_v31  ;;  %v3883_v14 = vadd.f32 %v3850_v11, %v3714_v27  ;;  %v3029_v55 = vpop.f32.mrb[23].mxu0 }
 0x400   : > { %v3132_v28 = vadd.f32 %v3882_v58, %v5660_v31  ;;  %v3884_v43 = vadd.f32 %v3029_v55, %v2226_v10 }
 0x401   : > { %3167 = vst.msk [vmem:[%s5667_s30 + $0xb0] sm:$0xff] %vm3144_vm7, %v3134_v15  ;;  %v3135_v13 = vadd.f32 %v3883_v14, %v5660_v31 }
 0x402   : > { %3165 = vst.msk [vmem:[%s5667_s30 + $0xa0] sm:$0xff] %vm3144_vm7, %v3132_v28  ;;  %v3133_v26 = vadd.f32 %v3884_v43, %v5660_v31  ;;  %v3717_v40 = vpop.f32.mrb[24].mxu1 }
 0x403   : > { %3168 = vst.msk [vmem:[%s5667_s30 + $0xb8] sm:$0xff] %vm3144_vm7, %v3135_v13  ;;  %v2239_v42 = vpop.f32.mrb[25].mxu1 }
 0x404   : > { %3166 = vst.msk [vmem:[%s5667_s30 + $0xa8] sm:$0xff] %vm3144_vm7, %v3133_v26  ;;  %v3853_v20 = vpop.f32.mrb[24].mxu0  ;;  %v3718_v54 = vpop.f32.mrb[26].mxu1 }
 0x405   : > { %v3885_v8 = vadd.f32 %v3853_v20, %v3717_v40  ;;  %v3042_v45 = vpop.f32.mrb[25].mxu0  ;;  %v2242_v46 = vpop.f32.mrb[27].mxu1 }
 0x406   : > { %v3886_v52 = vadd.f32 %v3042_v45, %v2239_v42  ;;  %v3854_v63 = vpop.f32.mrb[26].mxu0 }
 0x407   : > { %v3138_v35 = vadd.f32 %v3885_v8, %v5660_v31  ;;  %v3887_v44 = vadd.f32 %v3854_v63, %v3718_v54  ;;  %v3045_v59 = vpop.f32.mrb[27].mxu0 }
 0x408   : > { %v3136_v29 = vadd.f32 %v3886_v52, %v5660_v31  ;;  %v3888_v51 = vadd.f32 %v3045_v59, %v2242_v46 }
 0x409   : > { %3171 = vst.msk [vmem:[%s5667_s30 + $0xd0] sm:$0xff] %vm3144_vm7, %v3138_v35  ;;  %v3139_v32 = vadd.f32 %v3887_v44, %v5660_v31 }
 0x40a   : > { %3169 = vst.msk [vmem:[%s5667_s30 + $0xc0] sm:$0xff] %vm3144_vm7, %v3136_v29  ;;  %v3137_v41 = vadd.f32 %v3888_v51, %v5660_v31  ;;  %v3721_v48 = vpop.f32.mrb[28].mxu1 }
 0x40b   : > { %3172 = vst.msk [vmem:[%s5667_s30 + $0xd8] sm:$0xff] %vm3144_vm7, %v3139_v32  ;;  %v2255_v38 = vpop.f32.mrb[29].mxu1 }
 0x40c   : > { %3170 = vst.msk [vmem:[%s5667_s30 + $0xc8] sm:$0xff] %vm3144_vm7, %v3137_v41  ;;  %v3857_v50 = vpop.f32.mrb[28].mxu0  ;;  %v3722_v47 = vpop.f32.mrb[30].mxu1 }
 0x40d   : > { %v3889_v19 = vadd.f32 %v3857_v50, %v3721_v48  ;;  %v3058_v61 = vpop.f32.mrb[29].mxu0  ;;  %v2258_v62 = vpop.f32.mrb[31].mxu1 }
 0x40e   : > { %v3890_v12 = vadd.f32 %v3058_v61, %v2255_v38  ;;  %v3858_v18 = vpop.f32.mrb[30].mxu0 }
 0x40f   : > { %v3142_v5 = vadd.f32 %v3889_v19, %v5660_v31  ;;  %v3891_v25 = vadd.f32 %v3858_v18, %v3722_v47  ;;  %v3061_v30 = vpop.f32.mrb[31].mxu0 }
 0x410   : > { %v3140_v34 = vadd.f32 %v3890_v12, %v5660_v31  ;;  %v3892_v33 = vadd.f32 %v3061_v30, %v2258_v62 }
 0x411   : > { %3175 = vst.msk [vmem:[%s5667_s30 + $0xf0] sm:$0xff] %vm3144_vm7, %v3142_v5  ;;  %v3143_v21 = vadd.f32 %v3891_v25, %v5660_v31 }
 0x412   : > { %3173 = vst.msk [vmem:[%s5667_s30 + $0xe0] sm:$0xff] %vm3144_vm7, %v3140_v34  ;;  %v3141_v3 = vadd.f32 %v3892_v33, %v5660_v31 }
 0x413   : > { %3176 = vst.msk [vmem:[%s5667_s30 + $0xf8] sm:$0xff] %vm3144_vm7, %v3143_v21 }
 0x414   : > { %3174 = vst.msk [vmem:[%s5667_s30 + $0xe8] sm:$0xff] %vm3144_vm7, %v3141_v3 }
 0x415 PF: > { %s15_s18 = sadd.s32 1, %s4146_s18  }
 0x416   : > { %p12_p4 = scmp.ge.s32.totalorder %s15_s18, 4  }
 0x418   :  { %14 = sbr.rel (!%p12_p4) target bundleno = 1 (0x1), region = 78 }

</bundles_post_ra>
